<compile_context>
chip_gen: v7x
topology: tpu7x:2x2x1
jax: 0.10.0
libtpu: 0.0.40
codegen_flags: <defaults>
</compile_context>

<pallas_src>
import functools
import math

import jax
import jax.numpy as jnp
from jax.experimental import pallas as pl
from jax.experimental.pallas import tpu as pltpu


def _round_up(x, m):
    return (x + m - 1) // m * m


# ----------------------------------------------------------------------------
# Pallas kernel 1: tiled matmul + bias (+ReLU), bf16 inputs, f32 VMEM accumulator
# ----------------------------------------------------------------------------
def _matmul_kernel(x_ref, w_ref, b_ref, o_ref, acc_ref, *, relu):
    @pl.when(pl.program_id(2) == 0)
    def _():
        acc_ref[...] = jnp.zeros_like(acc_ref)

    acc_ref[...] += jnp.dot(x_ref[...], w_ref[...],
                            preferred_element_type=jnp.float32)

    @pl.when(pl.program_id(2) == pl.num_programs(2) - 1)
    def _():
        acc = acc_ref[...] + b_ref[...]
        if relu:
            acc = jnp.maximum(acc, 0.0)
        o_ref[...] = acc


def pallas_matmul(x, w_pad, b_pad, relu=False, tm=256, tn=256, tk=256):
    """y = x @ w + b (optional ReLU).

    x: (M, K) any float dtype; w_pad: (Kp, Np) bf16 pre-padded; b_pad: (1, Np) f32.
    Returns (M, Np) f32 (caller slices the valid N columns).
    """
    M, K = x.shape
    Kp, Np = w_pad.shape
    tm = min(tm, _round_up(M, 8))
    tn = min(tn, Np)
    tk = min(tk, Kp)
    Mp = _round_up(M, tm)
    # Cast BEFORE padding so padded lanes/rows are exact bf16 zeros.
    xp = jnp.zeros((Mp, Kp), jnp.bfloat16).at[:M, :K].set(x.astype(jnp.bfloat16))
    grid = (Mp // tm, Np // tn, Kp // tk)
    out = pl.pallas_call(
        functools.partial(_matmul_kernel, relu=relu),
        out_shape=jax.ShapeDtypeStruct((Mp, Np), jnp.float32),
        grid=grid,
        in_specs=[
            pl.BlockSpec((tm, tk), lambda i, j, k: (i, k)),
            pl.BlockSpec((tk, tn), lambda i, j, k: (k, j)),
            pl.BlockSpec((1, tn), lambda i, j, k: (0, j)),
        ],
        out_specs=pl.BlockSpec((tm, tn), lambda i, j, k: (i, j)),
        scratch_shapes=[pltpu.VMEM((tm, tn), jnp.float32)],
        compiler_params=pltpu.CompilerParams(
            dimension_semantics=("parallel", "parallel", "arbitrary")),
        cost_estimate=pl.CostEstimate(
            flops=2 * Mp * Kp * Np,
            transcendentals=0,
            bytes_accessed=(Mp * Kp + Kp * Np) * 2 + Mp * Np * 4),
    )(xp, w_pad, b_pad)
    return out[:M]


# ----------------------------------------------------------------------------
# Pallas kernel 2: fused MLP chain (x @ w1 (+ReLU) @ w2 (+ReLU) ... ) with all
# weights resident and intermediates kept on-chip.  Grid over rows only.
# ----------------------------------------------------------------------------
def _mlp_kernel(*refs, relus):
    n = len(relus)
    x_ref = refs[0]
    o_ref = refs[-1]
    h = x_ref[...]                                  # bf16 tile
    for li in range(n):
        w_ref = refs[1 + 2 * li]
        b_ref = refs[2 + 2 * li]
        acc = jnp.dot(h, w_ref[...], preferred_element_type=jnp.float32)
        acc = acc + b_ref[...]                      # f32 epilogue (v5e-safe)
        if relus[li]:
            acc = jnp.maximum(acc, 0.0)
        h = acc.astype(jnp.bfloat16) if li < n - 1 else acc
    o_ref[...] = h


def pallas_fused_mlp(x, layers):
    """Chained (matmul + bias [+ ReLU]) layers fused in one pallas_call.

    x: (M, K0); layers: list of (w_pad bf16 (Kp_i, Np_i), b_pad f32 (1, Np_i), relu).
    Consecutive layers must have Np_i == Kp_{i+1} (enforced by padding to 128).
    Returns (M, Np_last) f32.
    """
    M, K = x.shape
    K0p = layers[0][0].shape[0]
    Nlp = layers[-1][0].shape[1]
    tm = min(256, _round_up(M, 8))
    Mp = _round_up(M, tm)
    xp = jnp.zeros((Mp, K0p), jnp.bfloat16).at[:M, :K].set(x.astype(jnp.bfloat16))

    in_specs = [pl.BlockSpec((tm, K0p), lambda i: (i, 0))]
    args = [xp]
    for (w, b, _) in layers:
        Kp, Np = w.shape
        in_specs.append(pl.BlockSpec((Kp, Np), lambda i: (0, 0)))
        in_specs.append(pl.BlockSpec((1, Np), lambda i: (0, 0)))
        args.extend([w, b])
    relus = tuple(r for (_, _, r) in layers)

    out = pl.pallas_call(
        functools.partial(_mlp_kernel, relus=relus),
        out_shape=jax.ShapeDtypeStruct((Mp, Nlp), jnp.float32),
        grid=(Mp // tm,),
        in_specs=in_specs,
        out_specs=pl.BlockSpec((tm, Nlp), lambda i: (i, 0)),
        compiler_params=pltpu.CompilerParams(
            dimension_semantics=("parallel",)),
    )(*args)
    return out[:M]


# ----------------------------------------------------------------------------
# Conv = im2col (XLA glue, NHWC) + Pallas GEMM
# TODO(synk): for large feature maps a windowed-BlockSpec Pallas conv would
# avoid the 9x im2col HBM amplification; for these tiny maps the GEMM dominates.
# ----------------------------------------------------------------------------
def _im2col_nhwc(x_nhwc, kh, kw, stride, padding):
    N, H, W, C = x_nhwc.shape
    xp = jnp.pad(x_nhwc, ((0, 0), (padding, padding), (padding, padding), (0, 0)))
    Ho = (H + 2 * padding - kh) // stride + 1
    Wo = (W + 2 * padding - kw) // stride + 1
    patches = []
    for di in range(kh):
        for dj in range(kw):
            patches.append(
                xp[:, di:di + stride * Ho:stride, dj:dj + stride * Wo:stride, :])
    p = jnp.stack(patches, axis=3)                       # (N, Ho, Wo, kh*kw, C)
    return p.reshape(N * Ho * Wo, kh * kw * C), Ho, Wo


def _to_patch_matrix(w_oihw):
    """(Cout, Cin, kh, kw) -> (kh*kw*Cin, Cout), matching _im2col_nhwc ordering."""
    Cout, Cin, kh, kw = w_oihw.shape
    return w_oihw.transpose(2, 3, 1, 0).reshape(kh * kw * Cin, Cout)


def _pad_wb(w_mat, b_vec):
    """Pad to 128 multiples, cast weight to bf16 (done ONCE at init)."""
    K, N = w_mat.shape
    Kp, Np = _round_up(K, 128), _round_up(N, 128)
    wp = jnp.zeros((Kp, Np), jnp.bfloat16).at[:K, :N].set(w_mat.astype(jnp.bfloat16))
    bp = jnp.zeros((1, Np), jnp.float32).at[0, :N].set(b_vec.astype(jnp.float32))
    return wp, bp


# ----------------------------------------------------------------------------
# Box utilities (small elementwise glue)
# ----------------------------------------------------------------------------
_BBOX_XFORM_CLIP = math.log(1000.0 / 16.0)


def decode_boxes(deltas, boxes):
    w = boxes[..., 2] - boxes[..., 0]
    h = boxes[..., 3] - boxes[..., 1]
    cx = boxes[..., 0] + 0.5 * w
    cy = boxes[..., 1] + 0.5 * h
    dx, dy, dw, dh = (deltas[..., 0], deltas[..., 1],
                      deltas[..., 2], deltas[..., 3])
    pcx = cx + dx * w
    pcy = cy + dy * h
    pw = w * jnp.exp(jnp.clip(dw, -_BBOX_XFORM_CLIP, _BBOX_XFORM_CLIP))
    ph = h * jnp.exp(jnp.clip(dh, -_BBOX_XFORM_CLIP, _BBOX_XFORM_CLIP))
    return jnp.stack([pcx - 0.5 * pw, pcy - 0.5 * ph,
                      pcx + 0.5 * pw, pcy + 0.5 * ph], axis=-1)


def clip_boxes(boxes, h, w):
    x1 = jnp.clip(boxes[..., 0], 0.0, float(w))
    y1 = jnp.clip(boxes[..., 1], 0.0, float(h))
    x2 = jnp.clip(boxes[..., 2], 0.0, float(w))
    y2 = jnp.clip(boxes[..., 3], 0.0, float(h))
    return jnp.stack([x1, y1, x2, y2], axis=-1)


def roi_pool_nearest_nhwc(feat_hwc, boxes, spatial_scale, pool, Hf, Wf):
    # TODO(synk): torchvision ROIAlign uses bilinear interpolation gathers with
    # no clean Pallas equivalent; nearest-neighbor sampling done in plain JAX.
    x1, y1, x2, y2 = boxes[:, 0], boxes[:, 1], boxes[:, 2], boxes[:, 3]
    t = (jnp.arange(pool, dtype=jnp.float32) + 0.5) / pool
    cy = y1[:, None] + t[None, :] * (y2 - y1)[:, None]   # (K, P)
    cx = x1[:, None] + t[None, :] * (x2 - x1)[:, None]   # (K, P)
    fy = jnp.clip(jnp.floor(cy * spatial_scale).astype(jnp.int32), 0, Hf - 1)
    fx = jnp.clip(jnp.floor(cx * spatial_scale).astype(jnp.int32), 0, Wf - 1)
    pooled = feat_hwc[fy[:, :, None], fx[:, None, :], :]  # (K, P, P, C)
    return pooled.transpose(0, 3, 1, 2)                   # (K, C, P, P)


# ----------------------------------------------------------------------------
# GeneralizedRCNN (eval mode forward)
# ----------------------------------------------------------------------------
class GeneralizedRCNNPallas:
    def __init__(self, key, *, in_ch=3, feat_ch=16, anchor_sizes=(4.0, 8.0, 16.0),
                 num_classes=5, pool_size=4, pre_nms_top_n=8, feat_stride=2):
        self.feat_ch = feat_ch
        self.anchor_sizes = anchor_sizes
        self.num_anchors = len(anchor_sizes)
        self.num_classes = num_classes
        self.pool_size = pool_size
        self.pre_nms_top_n = pre_nms_top_n
        self.feat_stride = feat_stride
        self.image_mean = jnp.asarray([0.485, 0.456, 0.406], jnp.float32)
        self.image_std = jnp.asarray([0.229, 0.224, 0.225], jnp.float32)

        ks = jax.random.split(key, 8)
        s = 0.05
        A = self.num_anchors
        # backbone: single 3x3 stride-2 conv + ReLU
        self.backbone_w = jax.random.normal(ks[0], (feat_ch, in_ch, 3, 3), jnp.float32) * s
        self.backbone_b = jnp.zeros((feat_ch,), jnp.float32)
        # rpn head
        self.rpn_conv_w = jax.random.normal(ks[1], (feat_ch, feat_ch, 3, 3), jnp.float32) * s
        self.rpn_conv_b = jnp.zeros((feat_ch,), jnp.float32)
        self.rpn_cls_w = jax.random.normal(ks[2], (A, feat_ch, 1, 1), jnp.float32) * s
        self.rpn_cls_b = jnp.zeros((A,), jnp.float32)
        self.rpn_bbox_w = jax.random.normal(ks[3], (A * 4, feat_ch, 1, 1), jnp.float32) * s
        self.rpn_bbox_b = jnp.zeros((A * 4,), jnp.float32)
        # roi box head (TwoMLPHead) + FastRCNNPredictor
        rep, hid = feat_ch * pool_size * pool_size, 64
        self.fc1_w = jax.random.normal(ks[4], (rep, hid), jnp.float32) * s
        self.fc1_b = jnp.zeros((hid,), jnp.float32)
        self.fc2_w = jax.random.normal(ks[5], (hid, hid), jnp.float32) * s
        self.fc2_b = jnp.zeros((hid,), jnp.float32)
        self.cls_w = jax.random.normal(ks[6], (hid, num_classes), jnp.float32) * s
        self.cls_b = jnp.zeros((num_classes,), jnp.float32)
        self.bbox_w = jax.random.normal(ks[7], (hid, num_classes * 4), jnp.float32) * s
        self.bbox_b = jnp.zeros((num_classes * 4,), jnp.float32)

        # --- pre-pad / pre-cast weights once (eval mode: weights never change) ---
        # Fold transform normalization (x - mean) / std into the backbone conv:
        #   w' = w / std  (per input channel);  b' = b - sum(w * mean / std)
        inv_std = 1.0 / self.image_std
        w_fold = self.backbone_w * inv_std[None, :, None, None]
        b_fold = self.backbone_b - jnp.sum(
            self.backbone_w * (self.image_mean * inv_std)[None, :, None, None],
            axis=(1, 2, 3))
        self.bb_wp, self.bb_bp = _pad_wb(_to_patch_matrix(w_fold), b_fold)

        self.rpn_conv_wp, self.rpn_conv_bp = _pad_wb(
            _to_patch_matrix(self.rpn_conv_w), self.rpn_conv_b)
        # Fuse the two 1x1 RPN heads into one (feat_ch, A + 4A) matmul.
        rpn_head_w = jnp.concatenate(
            [_to_patch_matrix(self.rpn_cls_w), _to_patch_matrix(self.rpn_bbox_w)], axis=1)
        rpn_head_b = jnp.concatenate([self.rpn_cls_b, self.rpn_bbox_b])
        self.rpn_head_wp, self.rpn_head_bp = _pad_wb(rpn_head_w, rpn_head_b)

        self.fc1_wp, self.fc1_bp = _pad_wb(self.fc1_w, self.fc1_b)
        self.fc2_wp, self.fc2_bp = _pad_wb(self.fc2_w, self.fc2_b)
        pred_w = jnp.concatenate([self.cls_w, self.bbox_w], axis=1)
        pred_b = jnp.concatenate([self.cls_b, self.bbox_b])
        self.pred_wp, self.pred_bp = _pad_wb(pred_w, pred_b)

    # ---- rpn ---------------------------------------------------------------
    def _anchors(self, Hf, Wf):
        stride = float(self.feat_stride)
        cy = (jnp.arange(Hf, dtype=jnp.float32) + 0.5) * stride
        cx = (jnp.arange(Wf, dtype=jnp.float32) + 0.5) * stride
        cyg, cxg = jnp.meshgrid(cy, cx, indexing='ij')          # (Hf, Wf)
        cyg, cxg = cyg[:, :, None], cxg[:, :, None]
        half = jnp.asarray(self.anchor_sizes, jnp.float32)[None, None, :] / 2.0
        anchors = jnp.stack([cxg - half, cyg - half, cxg + half, cyg + half], axis=-1)
        return anchors.reshape(Hf * Wf * self.num_anchors, 4)

    def rpn(self, image_sizes, feats_nhwc):
        N, Hf, Wf, _ = feats_nhwc.shape
        A = self.num_anchors
        # Fused RPN head: 3x3 conv + ReLU -> [cls | bbox] 1x1 convs, one pallas_call.
        patches, _, _ = _im2col_nhwc(feats_nhwc, 3, 3, stride=1, padding=1)
        head = pallas_fused_mlp(patches, [
            (self.rpn_conv_wp, self.rpn_conv_bp, True),
            (self.rpn_head_wp, self.rpn_head_bp, False)])
        head = head[:, :5 * A]                                   # (N*Hf*Wf, A + 4A)
        logits = head[:, :A].reshape(N, Hf * Wf * A)
        deltas = head[:, A:].reshape(N, Hf * Wf * A, 4)
        anchors = self._anchors(Hf, Wf)
        boxes = decode_boxes(deltas, anchors[None])              # (N, HWA, 4)
        scores = jax.nn.sigmoid(logits)
        top_scores, idx = jax.lax.top_k(scores, self.pre_nms_top_n)
        proposals = jnp.take_along_axis(boxes, idx[:, :, None], axis=1)
        h, w = image_sizes[0]
        proposals = clip_boxes(proposals, h, w)
        # TODO(synk): torchvision RPN applies per-level NMS here; NMS has no
        # clean Pallas equivalent, so top-k proposals are returned directly.
        return proposals, {}

    # ---- roi heads ---------------------------------------------------------
    def roi_heads(self, feats_nhwc, proposals, image_sizes):
        N, Hf, Wf, C = feats_nhwc.shape
        K, P = proposals.shape[1], self.pool_size
        scale = 1.0 / float(self.feat_stride)
        pool_fn = functools.partial(roi_pool_nearest_nhwc, spatial_scale=scale,
                                    pool=P, Hf=Hf, Wf=Wf)
        pooled = jax.vmap(pool_fn)(feats_nhwc, proposals)        # (N, K, C, P, P)
        x = pooled.reshape(N * K, C * P * P)
        # Fused box head: fc1+ReLU -> fc2+ReLU -> [cls | bbox] predictor.
        head = pallas_fused_mlp(x, [
            (self.fc1_wp, self.fc1_bp, True),
            (self.fc2_wp, self.fc2_bp, True),
            (self.pred_wp, self.pred_bp, False)])
        nc = self.num_classes
        cls_logits = head[:, :nc]
        box_deltas = head[:, nc:nc + nc * 4]
        probs = jax.nn.softmax(cls_logits, axis=-1)
        fg = probs[:, 1:]                                        # drop background
        labels = jnp.argmax(fg, axis=-1) + 1
        scores = jnp.max(fg, axis=-1)
        box_deltas = box_deltas.reshape(N * K, nc, 4)
        sel = jnp.take_along_axis(box_deltas, labels[:, None, None], axis=1)[:, 0]
        boxes = decode_boxes(sel.reshape(N, K, 4), proposals)
        h, w = image_sizes[0]
        boxes = clip_boxes(boxes, h, w)
        # TODO(synk): per-class NMS / score thresholding of roi_heads omitted
        # (no Pallas equivalent); all proposals are returned as detections.
        detections = {'boxes': boxes,
                      'labels': labels.reshape(N, K),
                      'scores': scores.reshape(N, K)}
        return detections, {}

    # ---- transform.postprocess ----------------------------------------------
    def postprocess(self, detections, image_sizes, original_image_sizes):
        outs = []
        for i in range(detections['boxes'].shape[0]):
            oh, ow = original_image_sizes[i]
            h, w = image_sizes[i]
            scale = jnp.asarray([ow / w, oh / h, ow / w, oh / h], jnp.float32)
            outs.append({'boxes': detections['boxes'][i] * scale,
                         'labels': detections['labels'][i],
                         'scores': detections['scores'][i]})
        return outs

    # ---- forward -------------------------------------------------------------
    def __call__(self, images):
        # eval mode: GeneralizedRCNN.eager_outputs returns detections.
        original_image_sizes = [(int(img.shape[-2]), int(img.shape[-1]))
                                for img in images]
        # transform: normalization is folded into the backbone conv weights.
        # TODO(synk): dynamic per-image resize/batching of the transform is
        # host-side control flow; images are assumed pre-batched at one size.
        x = jnp.transpose(images, (0, 2, 3, 1)).astype(jnp.float32)   # NHWC
        N, H, W, _ = x.shape
        image_sizes = [(H, W)] * N
        # backbone: single 3x3 stride-2 conv + ReLU (tiled MXU GEMM).
        patches, Ho, Wo = _im2col_nhwc(x, 3, 3, stride=self.feat_stride, padding=1)
        feats_flat = pallas_matmul(patches, self.bb_wp, self.bb_bp, relu=True)
        feats = feats_flat[:, :self.feat_ch].reshape(N, Ho, Wo, self.feat_ch)
        features = {'0': feats}                                  # NHWC internally
        proposals, proposal_losses = self.rpn(image_sizes, features['0'])
        detections, detector_losses = self.roi_heads(features['0'], proposals,
                                                     image_sizes)
        detections = self.postprocess(detections, image_sizes,
                                      original_image_sizes)
        losses = {}
        losses.update(detector_losses)
        losses.update(proposal_losses)
        return detections  # eager_outputs (eval mode)


if __name__ == "__main__":
    key = jax.random.PRNGKey(0)
    k_img, k_model = jax.random.split(key)
    images = jax.random.uniform(k_img, (2, 3, 32, 32), jnp.float32)  # NCHW
    model = GeneralizedRCNNPallas(k_model)
    forward = jax.jit(model.__call__)
    detections = forward(images)
    for det in detections:
        jax.block_until_ready(det['boxes'])
        jax.block_until_ready(det['scores'])
        jax.block_until_ready(det['labels'])
    print("KERNEL_OK")
</pallas_src>

<mosaic_0001>
module attributes {stable_mosaic.version = 11 : i64} {
  func.func @_matmul_kernel(%arg0: i32, %arg1: i32, %arg2: i32, %arg3: memref<256x128xbf16, #tpu.memory_space<vmem>>, %arg4: memref<128x128xbf16, #tpu.memory_space<vmem>>, %arg5: memref<1x128xf32, #tpu.memory_space<vmem>>, %arg6: memref<256x128xf32, #tpu.memory_space<vmem>>, %arg7: memref<256x128xf32, #tpu.memory_space<vmem>>) attributes {dimension_semantics = [#tpu.dimension_semantics<parallel>, #tpu.dimension_semantics<parallel>, #tpu.dimension_semantics<arbitrary>], iteration_bounds = array<i64: 2, 1, 1>, scalar_prefetch = 0 : i64, scratch_operands = 1 : i64, tpu.core_type = #tpu.core_type<tc>, window_params = [{transform_indices = @transform_0, window_bounds = array<i64: 256, 128>}, {transform_indices = @transform_1, window_bounds = array<i64: 128, 128>}, {transform_indices = @transform_2, window_bounds = array<i64: 1, 128>}, {transform_indices = @transform_3, window_bounds = array<i64: 256, 128>}]} {
    %c0_i32 = arith.constant 0 : i32
    %0 = arith.cmpi eq, %arg2, %c0_i32 : i32
    %1 = arith.extui %0 : i1 to i32
    %c0_i32_0 = arith.constant 0 : i32
    %2 = arith.cmpi ne, %1, %c0_i32_0 : i32
    scf.if %2 {
      %cst_10 = arith.constant 0.000000e+00 : f32
      %12 = vector.broadcast %cst_10 : f32 to vector<256x128xf32>
      %c0_11 = arith.constant 0 : index
      %c0_12 = arith.constant 0 : index
      %13 = vector.load %arg7[%c0_11, %c0_12] : memref<256x128xf32, #tpu.memory_space<vmem>>, vector<256x128xf32>
      tpu.vector_store %arg7[%c0_11, %c0_12], %12 {strides = array<i32>} : memref<256x128xf32, #tpu.memory_space<vmem>>, vector<256x128xf32>,
    } else {
    }
    %c0 = arith.constant 0 : index
    %c0_1 = arith.constant 0 : index
    %3 = vector.load %arg7[%c0, %c0_1] : memref<256x128xf32, #tpu.memory_space<vmem>>, vector<256x128xf32>
    %c0_2 = arith.constant 0 : index
    %c0_3 = arith.constant 0 : index
    %4 = vector.load %arg3[%c0_2, %c0_3] : memref<256x128xbf16, #tpu.memory_space<vmem>>, vector<256x128xbf16>
    %c0_4 = arith.constant 0 : index
    %c0_5 = arith.constant 0 : index
    %5 = vector.load %arg4[%c0_4, %c0_5] : memref<128x128xbf16, #tpu.memory_space<vmem>>, vector<128x128xbf16>
    %cst = arith.constant dense<0.000000e+00> : vector<256x128xf32>
    %6 = tpu.matmul %4, %5, %cst {dimension_numbers = #tpu.dot_dimension_numbers<[1], [0], [0], [1], [0, 0, 1, 1], [], []>} : vector<256x128xbf16>, vector<128x128xbf16>, vector<256x128xf32> -> vector<256x128xf32>
    %7 = arith.addf %3, %6 : vector<256x128xf32>
    %c0_6 = arith.constant 0 : index
    %c0_7 = arith.constant 0 : index
    %8 = vector.load %arg7[%c0_6, %c0_7] : memref<256x128xf32, #tpu.memory_space<vmem>>, vector<256x128xf32>
    tpu.vector_store %arg7[%c0_6, %c0_7], %7 {strides = array<i32>} : memref<256x128xf32, #tpu.memory_space<vmem>>, vector<256x128xf32>,
    %c0_i32_8 = arith.constant 0 : i32
    %9 = arith.cmpi eq, %arg2, %c0_i32_8 : i32
    %10 = arith.extui %9 : i1 to i32
    %c0_i32_9 = arith.constant 0 : i32
    %11 = arith.cmpi ne, %10, %c0_i32_9 : i32
    scf.if %11 {
      %c0_10 = arith.constant 0 : index
      %c0_11 = arith.constant 0 : index
      %12 = vector.load %arg7[%c0_10, %c0_11] : memref<256x128xf32, #tpu.memory_space<vmem>>, vector<256x128xf32>
      %c0_12 = arith.constant 0 : index
      %c0_13 = arith.constant 0 : index
      %13 = vector.load %arg5[%c0_12, %c0_13] : memref<1x128xf32, #tpu.memory_space<vmem>>, vector<1x128xf32>
      %14 = vector.broadcast %13 : vector<1x128xf32> to vector<256x128xf32>
      %15 = arith.addf %12, %14 : vector<256x128xf32>
      %cst_14 = arith.constant 0.000000e+00 : f32
      %16 = vector.broadcast %cst_14 : f32 to vector<256x128xf32>
      %17 = arith.maximumf %15, %16 : vector<256x128xf32>
      %c0_15 = arith.constant 0 : index
      %c0_16 = arith.constant 0 : index
      %18 = vector.load %arg6[%c0_15, %c0_16] : memref<256x128xf32, #tpu.memory_space<vmem>>, vector<256x128xf32>
      tpu.vector_store %arg6[%c0_15, %c0_16], %17 {strides = array<i32>} : memref<256x128xf32, #tpu.memory_space<vmem>>, vector<256x128xf32>,
    } else {
    }
    return
  }
  func.func @transform_0(%arg0: i32, %arg1: i32, %arg2: i32) -> (i32, i32) {
    %c0_i32 = arith.constant 0 : i32
    return %arg0, %arg2 : i32, i32
  }
  func.func @transform_1(%arg0: i32, %arg1: i32, %arg2: i32) -> (i32, i32) {
    %c0_i32 = arith.constant 0 : i32
    return %arg2, %arg1 : i32, i32
  }
  func.func @transform_2(%arg0: i32, %arg1: i32, %arg2: i32) -> (i32, i32) {
    %c0_i32 = arith.constant 0 : i32
    %c0_i32_0 = arith.constant 0 : i32
    return %c0_i32, %arg1 : i32, i32
  }
  func.func @transform_3(%arg0: i32, %arg1: i32, %arg2: i32) -> (i32, i32) {
    %c0_i32 = arith.constant 0 : i32
    return %arg0, %arg1 : i32, i32
  }
}

module attributes {stable_mosaic.version = 11 : i64} {
  func.func @_mlp_kernel(%arg0: i32, %arg1: memref<256x256xbf16, #tpu.memory_space<vmem>>, %arg2: memref<256x128xbf16, #tpu.memory_space<vmem>>, %arg3: memref<1x128xf32, #tpu.memory_space<vmem>>, %arg4: memref<128x128xbf16, #tpu.memory_space<vmem>>, %arg5: memref<1x128xf32, #tpu.memory_space<vmem>>, %arg6: memref<256x128xf32, #tpu.memory_space<vmem>>) attributes {dimension_semantics = [#tpu.dimension_semantics<parallel>], iteration_bounds = array<i64: 2>, scalar_prefetch = 0 : i64, scratch_operands = 0 : i64, tpu.core_type = #tpu.core_type<tc>, window_params = [{transform_indices = @transform_0, window_bounds = array<i64: 256, 256>}, {pipeline_mode = #tpu.pipeline_mode<synchronous>, transform_indices = @transform_1, window_bounds = array<i64: 256, 128>}, {pipeline_mode = #tpu.pipeline_mode<synchronous>, transform_indices = @transform_2, window_bounds = array<i64: 1, 128>}, {pipeline_mode = #tpu.pipeline_mode<synchronous>, transform_indices = @transform_3, window_bounds = array<i64: 128, 128>}, {pipeline_mode = #tpu.pipeline_mode<synchronous>, transform_indices = @transform_4, window_bounds = array<i64: 1, 128>}, {transform_indices = @transform_5, window_bounds = array<i64: 256, 128>}]} {
    %c0 = arith.constant 0 : index
    %c0_0 = arith.constant 0 : index
    %0 = vector.load %arg1[%c0, %c0_0] : memref<256x256xbf16, #tpu.memory_space<vmem>>, vector<256x256xbf16>
    %c0_1 = arith.constant 0 : index
    %c0_2 = arith.constant 0 : index
    %1 = vector.load %arg2[%c0_1, %c0_2] : memref<256x128xbf16, #tpu.memory_space<vmem>>, vector<256x128xbf16>
    %cst = arith.constant dense<0.000000e+00> : vector<256x128xf32>
    %2 = tpu.matmul %0, %1, %cst {dimension_numbers = #tpu.dot_dimension_numbers<[1], [0], [0], [1], [0, 0, 1, 1], [], []>} : vector<256x256xbf16>, vector<256x128xbf16>, vector<256x128xf32> -> vector<256x128xf32>
    %c0_3 = arith.constant 0 : index
    %c0_4 = arith.constant 0 : index
    %3 = vector.load %arg3[%c0_3, %c0_4] : memref<1x128xf32, #tpu.memory_space<vmem>>, vector<1x128xf32>
    %4 = vector.broadcast %3 : vector<1x128xf32> to vector<256x128xf32>
    %5 = arith.addf %2, %4 : vector<256x128xf32>
    %cst_5 = arith.constant 0.000000e+00 : f32
    %6 = vector.broadcast %cst_5 : f32 to vector<256x128xf32>
    %7 = arith.maximumf %5, %6 : vector<256x128xf32>
    %8 = arith.truncf %7 : vector<256x128xf32> to vector<256x128xbf16>
    %c0_6 = arith.constant 0 : index
    %c0_7 = arith.constant 0 : index
    %9 = vector.load %arg4[%c0_6, %c0_7] : memref<128x128xbf16, #tpu.memory_space<vmem>>, vector<128x128xbf16>
    %cst_8 = arith.constant dense<0.000000e+00> : vector<256x128xf32>
    %10 = tpu.matmul %8, %9, %cst_8 {dimension_numbers = #tpu.dot_dimension_numbers<[1], [0], [0], [1], [0, 0, 1, 1], [], []>} : vector<256x128xbf16>, vector<128x128xbf16>, vector<256x128xf32> -> vector<256x128xf32>
    %c0_9 = arith.constant 0 : index
    %c0_10 = arith.constant 0 : index
    %11 = vector.load %arg5[%c0_9, %c0_10] : memref<1x128xf32, #tpu.memory_space<vmem>>, vector<1x128xf32>
    %12 = vector.broadcast %11 : vector<1x128xf32> to vector<256x128xf32>
    %13 = arith.addf %10, %12 : vector<256x128xf32>
    %c0_11 = arith.constant 0 : index
    %c0_12 = arith.constant 0 : index
    %14 = vector.load %arg6[%c0_11, %c0_12] : memref<256x128xf32, #tpu.memory_space<vmem>>, vector<256x128xf32>
    tpu.vector_store %arg6[%c0_11, %c0_12], %13 {strides = array<i32>} : memref<256x128xf32, #tpu.memory_space<vmem>>, vector<256x128xf32>,
    return
  }
  func.func @transform_0(%arg0: i32) -> (i32, i32) {
    %c0_i32 = arith.constant 0 : i32
    %c0_i32_0 = arith.constant 0 : i32
    return %arg0, %c0_i32 : i32, i32
  }
  func.func @transform_1(%arg0: i32) -> (i32, i32) {
    %c0_i32 = arith.constant 0 : i32
    %c0_i32_0 = arith.constant 0 : i32
    %c0_i32_1 = arith.constant 0 : i32
    return %c0_i32, %c0_i32_0 : i32, i32
  }
  func.func @transform_2(%arg0: i32) -> (i32, i32) {
    %c0_i32 = arith.constant 0 : i32
    %c0_i32_0 = arith.constant 0 : i32
    %c0_i32_1 = arith.constant 0 : i32
    return %c0_i32, %c0_i32_0 : i32, i32
  }
  func.func @transform_3(%arg0: i32) -> (i32, i32) {
    %c0_i32 = arith.constant 0 : i32
    %c0_i32_0 = arith.constant 0 : i32
    %c0_i32_1 = arith.constant 0 : i32
    return %c0_i32, %c0_i32_0 : i32, i32
  }
  func.func @transform_4(%arg0: i32) -> (i32, i32) {
    %c0_i32 = arith.constant 0 : i32
    %c0_i32_0 = arith.constant 0 : i32
    %c0_i32_1 = arith.constant 0 : i32
    return %c0_i32, %c0_i32_0 : i32, i32
  }
  func.func @transform_5(%arg0: i32) -> (i32, i32) {
    %c0_i32 = arith.constant 0 : i32
    %c0_i32_0 = arith.constant 0 : i32
    return %arg0, %c0_i32 : i32, i32
  }
}

module attributes {stable_mosaic.version = 11 : i64} {
  func.func @_mlp_kernel(%arg0: i32, %arg1: memref<16x256xbf16, #tpu.memory_space<vmem>>, %arg2: memref<256x128xbf16, #tpu.memory_space<vmem>>, %arg3: memref<1x128xf32, #tpu.memory_space<vmem>>, %arg4: memref<128x128xbf16, #tpu.memory_space<vmem>>, %arg5: memref<1x128xf32, #tpu.memory_space<vmem>>, %arg6: memref<128x128xbf16, #tpu.memory_space<vmem>>, %arg7: memref<1x128xf32, #tpu.memory_space<vmem>>, %arg8: memref<16x128xf32, #tpu.memory_space<vmem>>) attributes {dimension_semantics = [#tpu.dimension_semantics<parallel>], iteration_bounds = array<i64: 1>, scalar_prefetch = 0 : i64, scratch_operands = 0 : i64, tpu.core_type = #tpu.core_type<tc>, window_params = [{transform_indices = @transform_0, window_bounds = array<i64: 16, 256>}, {pipeline_mode = #tpu.pipeline_mode<synchronous>, transform_indices = @transform_1, window_bounds = array<i64: 256, 128>}, {pipeline_mode = #tpu.pipeline_mode<synchronous>, transform_indices = @transform_2, window_bounds = array<i64: 1, 128>}, {pipeline_mode = #tpu.pipeline_mode<synchronous>, transform_indices = @transform_3, window_bounds = array<i64: 128, 128>}, {pipeline_mode = #tpu.pipeline_mode<synchronous>, transform_indices = @transform_4, window_bounds = array<i64: 1, 128>}, {pipeline_mode = #tpu.pipeline_mode<synchronous>, transform_indices = @transform_5, window_bounds = array<i64: 128, 128>}, {pipeline_mode = #tpu.pipeline_mode<synchronous>, transform_indices = @transform_6, window_bounds = array<i64: 1, 128>}, {transform_indices = @transform_7, window_bounds = array<i64: 16, 128>}]} {
    %c0 = arith.constant 0 : index
    %c0_0 = arith.constant 0 : index
    %0 = vector.load %arg1[%c0, %c0_0] : memref<16x256xbf16, #tpu.memory_space<vmem>>, vector<16x256xbf16>
    %c0_1 = arith.constant 0 : index
    %c0_2 = arith.constant 0 : index
    %1 = vector.load %arg2[%c0_1, %c0_2] : memref<256x128xbf16, #tpu.memory_space<vmem>>, vector<256x128xbf16>
    %cst = arith.constant dense<0.000000e+00> : vector<16x128xf32>
    %2 = tpu.matmul %0, %1, %cst {dimension_numbers = #tpu.dot_dimension_numbers<[1], [0], [0], [1], [0, 0, 1, 1], [], []>} : vector<16x256xbf16>, vector<256x128xbf16>, vector<16x128xf32> -> vector<16x128xf32>
    %c0_3 = arith.constant 0 : index
    %c0_4 = arith.constant 0 : index
    %3 = vector.load %arg3[%c0_3, %c0_4] : memref<1x128xf32, #tpu.memory_space<vmem>>, vector<1x128xf32>
    %4 = vector.broadcast %3 : vector<1x128xf32> to vector<16x128xf32>
    %5 = arith.addf %2, %4 : vector<16x128xf32>
    %cst_5 = arith.constant 0.000000e+00 : f32
    %6 = vector.broadcast %cst_5 : f32 to vector<16x128xf32>
    %7 = arith.maximumf %5, %6 : vector<16x128xf32>
    %8 = arith.truncf %7 : vector<16x128xf32> to vector<16x128xbf16>
    %c0_6 = arith.constant 0 : index
    %c0_7 = arith.constant 0 : index
    %9 = vector.load %arg4[%c0_6, %c0_7] : memref<128x128xbf16, #tpu.memory_space<vmem>>, vector<128x128xbf16>
    %cst_8 = arith.constant dense<0.000000e+00> : vector<16x128xf32>
    %10 = tpu.matmul %8, %9, %cst_8 {dimension_numbers = #tpu.dot_dimension_numbers<[1], [0], [0], [1], [0, 0, 1, 1], [], []>} : vector<16x128xbf16>, vector<128x128xbf16>, vector<16x128xf32> -> vector<16x128xf32>
    %c0_9 = arith.constant 0 : index
    %c0_10 = arith.constant 0 : index
    %11 = vector.load %arg5[%c0_9, %c0_10] : memref<1x128xf32, #tpu.memory_space<vmem>>, vector<1x128xf32>
    %12 = vector.broadcast %11 : vector<1x128xf32> to vector<16x128xf32>
    %13 = arith.addf %10, %12 : vector<16x128xf32>
    %cst_11 = arith.constant 0.000000e+00 : f32
    %14 = vector.broadcast %cst_11 : f32 to vector<16x128xf32>
    %15 = arith.maximumf %13, %14 : vector<16x128xf32>
    %16 = arith.truncf %15 : vector<16x128xf32> to vector<16x128xbf16>
    %c0_12 = arith.constant 0 : index
    %c0_13 = arith.constant 0 : index
    %17 = vector.load %arg6[%c0_12, %c0_13] : memref<128x128xbf16, #tpu.memory_space<vmem>>, vector<128x128xbf16>
    %cst_14 = arith.constant dense<0.000000e+00> : vector<16x128xf32>
    %18 = tpu.matmul %16, %17, %cst_14 {dimension_numbers = #tpu.dot_dimension_numbers<[1], [0], [0], [1], [0, 0, 1, 1], [], []>} : vector<16x128xbf16>, vector<128x128xbf16>, vector<16x128xf32> -> vector<16x128xf32>
    %c0_15 = arith.constant 0 : index
    %c0_16 = arith.constant 0 : index
    %19 = vector.load %arg7[%c0_15, %c0_16] : memref<1x128xf32, #tpu.memory_space<vmem>>, vector<1x128xf32>
    %20 = vector.broadcast %19 : vector<1x128xf32> to vector<16x128xf32>
    %21 = arith.addf %18, %20 : vector<16x128xf32>
    %c0_17 = arith.constant 0 : index
    %c0_18 = arith.constant 0 : index
    %22 = vector.load %arg8[%c0_17, %c0_18] : memref<16x128xf32, #tpu.memory_space<vmem>>, vector<16x128xf32>
    tpu.vector_store %arg8[%c0_17, %c0_18], %21 {strides = array<i32>} : memref<16x128xf32, #tpu.memory_space<vmem>>, vector<16x128xf32>,
    return
  }
  func.func @transform_0(%arg0: i32) -> (i32, i32) {
    %c0_i32 = arith.constant 0 : i32
    %c0_i32_0 = arith.constant 0 : i32
    return %arg0, %c0_i32 : i32, i32
  }
  func.func @transform_1(%arg0: i32) -> (i32, i32) {
    %c0_i32 = arith.constant 0 : i32
    %c0_i32_0 = arith.constant 0 : i32
    %c0_i32_1 = arith.constant 0 : i32
    return %c0_i32, %c0_i32_0 : i32, i32
  }
  func.func @transform_2(%arg0: i32) -> (i32, i32) {
    %c0_i32 = arith.constant 0 : i32
    %c0_i32_0 = arith.constant 0 : i32
    %c0_i32_1 = arith.constant 0 : i32
    return %c0_i32, %c0_i32_0 : i32, i32
  }
  func.func @transform_3(%arg0: i32) -> (i32, i32) {
    %c0_i32 = arith.constant 0 : i32
    %c0_i32_0 = arith.constant 0 : i32
    %c0_i32_1 = arith.constant 0 : i32
    return %c0_i32, %c0_i32_0 : i32, i32
  }
  func.func @transform_4(%arg0: i32) -> (i32, i32) {
    %c0_i32 = arith.constant 0 : i32
    %c0_i32_0 = arith.constant 0 : i32
    %c0_i32_1 = arith.constant 0 : i32
    return %c0_i32, %c0_i32_0 : i32, i32
  }
  func.func @transform_5(%arg0: i32) -> (i32, i32) {
    %c0_i32 = arith.constant 0 : i32
    %c0_i32_0 = arith.constant 0 : i32
    %c0_i32_1 = arith.constant 0 : i32
    return %c0_i32, %c0_i32_0 : i32, i32
  }
  func.func @transform_6(%arg0: i32) -> (i32, i32) {
    %c0_i32 = arith.constant 0 : i32
    %c0_i32_0 = arith.constant 0 : i32
    %c0_i32_1 = arith.constant 0 : i32
    return %c0_i32, %c0_i32_0 : i32, i32
  }
  func.func @transform_7(%arg0: i32) -> (i32, i32) {
    %c0_i32 = arith.constant 0 : i32
    %c0_i32_0 = arith.constant 0 : i32
    return %arg0, %c0_i32 : i32, i32
  }
}

</mosaic_0001>

<bundles_post_ra>
// kernel: a_call__.3
= control target key start
LH: loop header
LB: loop body
LE: loop exit
PB: predicated region body
PF: predicated region fallthrough
CT: control target
= control target key end

     0   :  { %s1212_s12 = smov 0   ;;  %s1214_s13 = smov 0   ;;  %s1362_s0 = inlined_call_operand.vmem [shape: bf16[512,128], index: 0, kind: input, shape index: {}]   ;;  %s1363_s1 = inlined_call_operand.vmem [shape: bf16[128,128], index: 1, kind: input, shape index: {}]   ;;  %s1364_s2 = inlined_call_operand.vmem [shape: f32[1,128], index: 2, kind: input, shape index: {}]   ;;  %s1365_s3 = inlined_call_operand.vmem [shape: f32[512,128], index: 3, kind: output, shape index: {}]  }
   0x1   :  { %s1216_s14 = smov 0  }
   0x2 LB: > { %s32_s15 = sadd.s32 1, %s1186_s13  ;;  %p1000_p0 = scmp.ge.s32.totalorder %s1190_s14, 1  ;;  %s1190_s14 = sphi %s1216_s14, %s13_s14   ;;  %s1186_s13 = sphi %s1214_s13, %s1367_s13   ;;  %s1182_s12 = sphi %s1212_s12, %s1366_s12  }
   0x3   : > { %p34_p1 = scmp.ge.s32.totalorder %s32_s15, 2  ;;  %p188_p2 = scmp.lt.s32.totalorder %s1190_s14, 3 }
   0x5   : > { %s1369_s15 = smov (%p34_p1, %s32_s15), 0  ;;  %p189_p3 = pnand %p1000_p0, %p188_p2 }
   0x6   : > { %v1144_v0 = vld [vmem:[%s1363_s1] sm:$0xff] (!%p189_p3)   ;;  %s1001_s18 = sshll.u32 (!%p189_p3), %s1182_s12, 5  ;;  %v1145_v1 = vld [vmem:[%s1363_s1 + $0x8] sm:$0xff] (!%p189_p3)   ;;  %v1146_v2 = vld [vmem:[%s1363_s1 + $0x10] sm:$0xff] (!%p189_p3)  }
   0x7   : > { %192 = sbr.rel (%p189_p3) target bundleno = 283 (0x11b), region = 32  ;;  %p230_p4 = scmp.lt.s32.totalorder (!%p189_p3), %s1001_s18, 63  ;;  %1056 = vmatprep.subr.bf16.mxu0 (!%p189_p3), %v1144_v0  ;;  %1104 = vmatprep.subr.bf16.mxu1 (!%p189_p3), %v1144_v0  ;;  %v1147_v3 = vld [vmem:[%s1363_s1 + $0x18] sm:$0xff] (!%p189_p3)   ;;  %v1148_v6 = vld [vmem:[%s1363_s1 + $0x20] sm:$0xff] (!%p189_p3)   ;;  %v1149_v7 = vld [vmem:[%s1363_s1 + $0x28] sm:$0xff] (!%p189_p3)  }
   0x8   : > { %1057 = vmatpush3.bf16.msra.mxu0 (!%p189_p3), %v1144_v0  ;;  %1112 = vmatpush3.bf16.msra.mxu1 (!%p189_p3), %v1144_v0  ;;  %v1150_v8 = vld [vmem:[%s1363_s1 + $0x30] sm:$0xff] (!%p189_p3)   ;;  %v1151_v9 = vld [vmem:[%s1363_s1 + $0x38] sm:$0xff] (!%p189_p3)   ;;  %v1281_v24 = vld [vmem:[%s1364_s2] ss:$0 sm:$0xff] (!%p189_p3) }
   0x9   : > { %1058 = vmatprep.subr.bf16.mxu0 (!%p189_p3), %v1145_v1  ;;  %1105 = vmatprep.subr.bf16.mxu1 (!%p189_p3), %v1145_v1 }
   0xc   : > { %1059 = vmatpush3.bf16.msra.mxu0 (!%p189_p3), %v1145_v1  ;;  %1113 = vmatpush3.bf16.msra.mxu1 (!%p189_p3), %v1145_v1 }
   0xd   : > { %1060 = vmatprep.subr.bf16.mxu0 (!%p189_p3), %v1146_v2  ;;  %1106 = vmatprep.subr.bf16.mxu1 (!%p189_p3), %v1146_v2 }
   0xe   : > { %s1371_s18 = smov (!%p230_p4, %s1001_s18), 63 }
   0xf   : > { %s1002_s23 = sshll.u32 %s1371_s18, 2  ;;  %s1004_s12 = sshll.u32 %s1371_s18, 3 }
  0x10   : > { %s1245_s26 = scalar_lea.vmem %s1362_s0, %s1002_s23  ;;  %1061 = vmatpush3.bf16.msra.mxu0 %v1146_v2  ;;  %1114 = vmatpush3.bf16.msra.mxu1 %v1146_v2  ;;  %s1289_s19 = scalar_lea.vmem %s1365_s3, %s1004_s12 }
  0x11   : > { %v1152_v4 = vld [vmem:[%s1245_s26] sm:$0xff]   ;;  %1062 = vmatprep.subr.bf16.mxu0 %v1147_v3  ;;  %1107 = vmatprep.subr.bf16.mxu1 %v1147_v3  ;;  %v1154_v10 = vld [vmem:[%s1245_s26 + $0x8] sm:$0xff]   ;;  %v1156_v12 = vld [vmem:[%s1245_s26 + $0x10] sm:$0xff]  }
  0x12   : > { %v1153_v5 = vld [vmem:[%s1245_s26 + $0x40] sm:$0xff]   ;;  %1072 = vmatprep.mubr.bf16.mxu0 %v1152_v4  ;;  %v1155_v11 = vld [vmem:[%s1245_s26 + $0x48] sm:$0xff]   ;;  %v1157_v13 = vld [vmem:[%s1245_s26 + $0x50] sm:$0xff]  }
  0x13   : > { %1088 = vmatprep.mubr.bf16.mxu1 %v1153_v5  ;;  %v1158_v14 = vld [vmem:[%s1245_s26 + $0x18] sm:$0xff]   ;;  %v1160_v16 = vld [vmem:[%s1245_s26 + $0x20] sm:$0xff]   ;;  %v1162_v18 = vld [vmem:[%s1245_s26 + $0x28] sm:$0xff]  }
  0x14   : > { %1063 = vmatpush3.bf16.msra.mxu0 %v1147_v3  ;;  %1115 = vmatpush3.bf16.msra.mxu1 %v1147_v3  ;;  %v1159_v15 = vld [vmem:[%s1245_s26 + $0x58] sm:$0xff]   ;;  %v1161_v17 = vld [vmem:[%s1245_s26 + $0x60] sm:$0xff]   ;;  %v1163_v19 = vld [vmem:[%s1245_s26 + $0x68] sm:$0xff]  }
  0x15   : > { %1064 = vmatprep.subr.bf16.mxu0 %v1148_v6  ;;  %1108 = vmatprep.subr.bf16.mxu1 %v1148_v6  ;;  %v1164_v20 = vld [vmem:[%s1245_s26 + $0x30] sm:$0xff]   ;;  %v1166_v22 = vld [vmem:[%s1245_s26 + $0x38] sm:$0xff]  }
  0x16   : > { %v1165_v21 = vld [vmem:[%s1245_s26 + $0x70] sm:$0xff]   ;;  %v1167_v23 = vld [vmem:[%s1245_s26 + $0x78] sm:$0xff]  }
  0x18   : > { %1065 = vmatpush3.bf16.msra.mxu0 %v1148_v6  ;;  %1116 = vmatpush3.bf16.msra.mxu1 %v1148_v6 }
  0x19   : > { %1066 = vmatprep.subr.bf16.mxu0 %v1149_v7  ;;  %1109 = vmatprep.subr.bf16.mxu1 %v1149_v7 }
  0x1c   : > { %1067 = vmatpush3.bf16.msra.mxu0 %v1149_v7  ;;  %1117 = vmatpush3.bf16.msra.mxu1 %v1149_v7 }
  0x1d   : > { %1068 = vmatprep.subr.bf16.mxu0 %v1150_v8  ;;  %1110 = vmatprep.subr.bf16.mxu1 %v1150_v8 }
  0x20   : > { %1069 = vmatpush3.bf16.msra.mxu0 %v1150_v8  ;;  %1118 = vmatpush3.bf16.msra.mxu1 %v1150_v8 }
  0x21   : > { %1070 = vmatprep.subr.bf16.mxu0 %v1151_v9  ;;  %1111 = vmatprep.subr.bf16.mxu1 %v1151_v9 }
  0x24   : > { %1071 = vmatpush3.bf16.msra.mxu0 %v1151_v9  ;;  %1119 = vmatpush3.bf16.msra.mxu1 %v1151_v9 }
  0x27   : > { %1073 = vmatmul.mubr.bf16.vlgmr.msra.gmra.mrb[0].mxu0 %v1154_v10  ;;  %1089 = vmatmul.mubr.bf16.vlgmr.msra.gmra.mrb[0].mxu1 %v1155_v11 }
  0x28   : > { %1076 = vmatprep.mubr.bf16.mxu0 %v1156_v12  ;;  %1092 = vmatprep.mubr.bf16.mxu1 %v1157_v13 }
  0x2f   : > { %1077 = vmatmul.mubr.bf16.gmra.mrb[4].mxu0 %v1158_v14  ;;  %1093 = vmatmul.mubr.bf16.gmra.mrb[4].mxu1 %v1159_v15 }
  0x30   : > { %1080 = vmatprep.mubr.bf16.mxu0 %v1160_v16  ;;  %1096 = vmatprep.mubr.bf16.mxu1 %v1161_v17 }
  0x37   : > { %1081 = vmatmul.mubr.bf16.gmra.mrb[8].mxu0 %v1162_v18  ;;  %1097 = vmatmul.mubr.bf16.gmra.mrb[8].mxu1 %v1163_v19 }
  0x38   : > { %1084 = vmatprep.mubr.bf16.mxu0 %v1164_v20  ;;  %1100 = vmatprep.mubr.bf16.mxu1 %v1165_v21 }
  0x3f   : > { %1085 = vmatmul.mubr.bf16.gmra.mrb[12].mxu0 %v1166_v22  ;;  %1101 = vmatmul.mubr.bf16.gmra.mrb[12].mxu1 %v1167_v23 }
  0xfa   : > { %v1074_v25 = vpop.f32.mrb[0].mxu0  ;;  %v1090_v26 = vpop.f32.mrb[0].mxu1 }
  0xfb   : > { %v789_v27 = vadd.f32 %v1074_v25, %v1281_v24  ;;  %v805_v28 = vadd.f32 %v1090_v26, %v1281_v24  ;;  %v554_v29 = vpop.f32.mrb[1].mxu0  ;;  %v618_v30 = vpop.f32.mrb[1].mxu1 }
  0xfc   : > { %v787_v31 = vadd.f32 %v1281_v24, %v554_v29  ;;  %v803_v32 = vadd.f32 %v1281_v24, %v618_v30  ;;  %v1075_v33 = vpop.f32.mrb[2].mxu0  ;;  %v1091_v34 = vpop.f32.mrb[2].mxu1 }
  0xfd   : > { %v821_v35 = vmax.f32 %v789_v27, 0.0  ;;  %v837_v36 = vmax.f32 %v805_v28, 0.0  ;;  %v790_v37 = vadd.f32 %v1075_v33, %v1281_v24  ;;  %v806_v38 = vadd.f32 %v1091_v34, %v1281_v24  ;;  %v557_v39 = vpop.f32.mrb[3].mxu0  ;;  %v621_v40 = vpop.f32.mrb[3].mxu1 }
  0xfe   : > { %v819_v41 = vmax.f32 %v787_v31, 0.0  ;;  %v835_v42 = vmax.f32 %v803_v32, 0.0  ;;  %v788_v43 = vadd.f32 %v1281_v24, %v557_v39  ;;  %v804_v44 = vadd.f32 %v1281_v24, %v621_v40 }
  0xff   : > { %853 = vst [vmem:[%s1289_s19 + $0x10] sm:$0xff] %v821_v35  ;;  %869 = vst [vmem:[%s1289_s19 + $0x90] sm:$0xff] %v837_v36  ;;  %v822_v45 = vmax.f32 %v790_v37, 0.0  ;;  %v838_v46 = vmax.f32 %v806_v38, 0.0 }
 0x100   : > { %851 = vst [vmem:[%s1289_s19] sm:$0xff] %v819_v41  ;;  %867 = vst [vmem:[%s1289_s19 + $0x80] sm:$0xff] %v835_v42  ;;  %v820_v47 = vmax.f32 %v788_v43, 0.0  ;;  %v836_v48 = vmax.f32 %v804_v44, 0.0 }
 0x101   : > { %854 = vst [vmem:[%s1289_s19 + $0x18] sm:$0xff] %v822_v45  ;;  %870 = vst [vmem:[%s1289_s19 + $0x98] sm:$0xff] %v838_v46 }
 0x102   : > { %852 = vst [vmem:[%s1289_s19 + $0x8] sm:$0xff] %v820_v47  ;;  %868 = vst [vmem:[%s1289_s19 + $0x88] sm:$0xff] %v836_v48  ;;  %v1078_v49 = vpop.f32.mrb[4].mxu0  ;;  %v1094_v50 = vpop.f32.mrb[4].mxu1 }
 0x103   : > { %v793_v51 = vadd.f32 %v1078_v49, %v1281_v24  ;;  %v809_v52 = vadd.f32 %v1094_v50, %v1281_v24  ;;  %v570_v53 = vpop.f32.mrb[5].mxu0  ;;  %v634_v54 = vpop.f32.mrb[5].mxu1 }
 0x104   : > { %v791_v55 = vadd.f32 %v1281_v24, %v570_v53  ;;  %v807_v56 = vadd.f32 %v1281_v24, %v634_v54  ;;  %v1079_v57 = vpop.f32.mrb[6].mxu0  ;;  %v1095_v58 = vpop.f32.mrb[6].mxu1 }
 0x105   : > { %v825_v59 = vmax.f32 %v793_v51, 0.0  ;;  %v841_v60 = vmax.f32 %v809_v52, 0.0  ;;  %v794_v61 = vadd.f32 %v1079_v57, %v1281_v24  ;;  %v810_v62 = vadd.f32 %v1095_v58, %v1281_v24  ;;  %v573_v63 = vpop.f32.mrb[7].mxu0  ;;  %v637_v0 = vpop.f32.mrb[7].mxu1 }
 0x106   : > { %v823_v1 = vmax.f32 %v791_v55, 0.0  ;;  %v839_v2 = vmax.f32 %v807_v56, 0.0  ;;  %v792_v3 = vadd.f32 %v1281_v24, %v573_v63  ;;  %v808_v4 = vadd.f32 %v1281_v24, %v637_v0 }
 0x107   : > { %857 = vst [vmem:[%s1289_s19 + $0x30] sm:$0xff] %v825_v59  ;;  %873 = vst [vmem:[%s1289_s19 + $0xb0] sm:$0xff] %v841_v60  ;;  %v826_v5 = vmax.f32 %v794_v61, 0.0  ;;  %v842_v6 = vmax.f32 %v810_v62, 0.0 }
 0x108   : > { %855 = vst [vmem:[%s1289_s19 + $0x20] sm:$0xff] %v823_v1  ;;  %871 = vst [vmem:[%s1289_s19 + $0xa0] sm:$0xff] %v839_v2  ;;  %v824_v7 = vmax.f32 %v792_v3, 0.0  ;;  %v840_v8 = vmax.f32 %v808_v4, 0.0 }
 0x109   : > { %858 = vst [vmem:[%s1289_s19 + $0x38] sm:$0xff] %v826_v5  ;;  %874 = vst [vmem:[%s1289_s19 + $0xb8] sm:$0xff] %v842_v6 }
 0x10a   : > { %856 = vst [vmem:[%s1289_s19 + $0x28] sm:$0xff] %v824_v7  ;;  %872 = vst [vmem:[%s1289_s19 + $0xa8] sm:$0xff] %v840_v8  ;;  %v1082_v9 = vpop.f32.mrb[8].mxu0  ;;  %v1098_v10 = vpop.f32.mrb[8].mxu1 }
 0x10b   : > { %v797_v11 = vadd.f32 %v1082_v9, %v1281_v24  ;;  %v813_v12 = vadd.f32 %v1098_v10, %v1281_v24  ;;  %v586_v13 = vpop.f32.mrb[9].mxu0  ;;  %v650_v14 = vpop.f32.mrb[9].mxu1 }
 0x10c   : > { %v795_v15 = vadd.f32 %v1281_v24, %v586_v13  ;;  %v811_v16 = vadd.f32 %v1281_v24, %v650_v14  ;;  %v1083_v17 = vpop.f32.mrb[10].mxu0  ;;  %v1099_v18 = vpop.f32.mrb[10].mxu1 }
 0x10d   : > { %v829_v19 = vmax.f32 %v797_v11, 0.0  ;;  %v845_v20 = vmax.f32 %v813_v12, 0.0  ;;  %v798_v21 = vadd.f32 %v1083_v17, %v1281_v24  ;;  %v814_v22 = vadd.f32 %v1099_v18, %v1281_v24  ;;  %v589_v23 = vpop.f32.mrb[11].mxu0  ;;  %v653_v25 = vpop.f32.mrb[11].mxu1 }
 0x10e   : > { %v827_v26 = vmax.f32 %v795_v15, 0.0  ;;  %v843_v27 = vmax.f32 %v811_v16, 0.0  ;;  %v796_v28 = vadd.f32 %v1281_v24, %v589_v23  ;;  %v812_v29 = vadd.f32 %v1281_v24, %v653_v25 }
 0x10f   : > { %861 = vst [vmem:[%s1289_s19 + $0x50] sm:$0xff] %v829_v19  ;;  %877 = vst [vmem:[%s1289_s19 + $0xd0] sm:$0xff] %v845_v20  ;;  %v830_v30 = vmax.f32 %v798_v21, 0.0  ;;  %v846_v31 = vmax.f32 %v814_v22, 0.0 }
 0x110   : > { %859 = vst [vmem:[%s1289_s19 + $0x40] sm:$0xff] %v827_v26  ;;  %875 = vst [vmem:[%s1289_s19 + $0xc0] sm:$0xff] %v843_v27  ;;  %v828_v32 = vmax.f32 %v796_v28, 0.0  ;;  %v844_v33 = vmax.f32 %v812_v29, 0.0 }
 0x111   : > { %862 = vst [vmem:[%s1289_s19 + $0x58] sm:$0xff] %v830_v30  ;;  %878 = vst [vmem:[%s1289_s19 + $0xd8] sm:$0xff] %v846_v31 }
 0x112   : > { %860 = vst [vmem:[%s1289_s19 + $0x48] sm:$0xff] %v828_v32  ;;  %876 = vst [vmem:[%s1289_s19 + $0xc8] sm:$0xff] %v844_v33  ;;  %v1086_v34 = vpop.f32.mrb[12].mxu0  ;;  %v1102_v35 = vpop.f32.mrb[12].mxu1 }
 0x113   : > { %v801_v36 = vadd.f32 %v1086_v34, %v1281_v24  ;;  %v817_v37 = vadd.f32 %v1102_v35, %v1281_v24  ;;  %v602_v38 = vpop.f32.mrb[13].mxu0  ;;  %v666_v39 = vpop.f32.mrb[13].mxu1 }
 0x114   : > { %v799_v40 = vadd.f32 %v1281_v24, %v602_v38  ;;  %v815_v41 = vadd.f32 %v1281_v24, %v666_v39  ;;  %v1087_v42 = vpop.f32.mrb[14].mxu0  ;;  %v1103_v43 = vpop.f32.mrb[14].mxu1 }
 0x115   : > { %v833_v44 = vmax.f32 %v801_v36, 0.0  ;;  %v849_v45 = vmax.f32 %v817_v37, 0.0  ;;  %v802_v46 = vadd.f32 %v1087_v42, %v1281_v24  ;;  %v818_v47 = vadd.f32 %v1103_v43, %v1281_v24  ;;  %v605_v48 = vpop.f32.mrb[15].mxu0  ;;  %v669_v49 = vpop.f32.mrb[15].mxu1 }
 0x116   : > { %v831_v50 = vmax.f32 %v799_v40, 0.0  ;;  %v847_v51 = vmax.f32 %v815_v41, 0.0  ;;  %v800_v52 = vadd.f32 %v1281_v24, %v605_v48  ;;  %v816_v53 = vadd.f32 %v1281_v24, %v669_v49 }
 0x117   : > { %865 = vst [vmem:[%s1289_s19 + $0x70] sm:$0xff] %v833_v44  ;;  %881 = vst [vmem:[%s1289_s19 + $0xf0] sm:$0xff] %v849_v45  ;;  %v834_v54 = vmax.f32 %v802_v46, 0.0  ;;  %v850_v55 = vmax.f32 %v818_v47, 0.0 }
 0x118   : > { %863 = vst [vmem:[%s1289_s19 + $0x60] sm:$0xff] %v831_v50  ;;  %879 = vst [vmem:[%s1289_s19 + $0xe0] sm:$0xff] %v847_v51  ;;  %v832_v56 = vmax.f32 %v800_v52, 0.0  ;;  %v848_v57 = vmax.f32 %v816_v53, 0.0 }
 0x119   : > { %866 = vst [vmem:[%s1289_s19 + $0x78] sm:$0xff] %v834_v54  ;;  %882 = vst [vmem:[%s1289_s19 + $0xf8] sm:$0xff] %v850_v55 }
 0x11a   : > { %864 = vst [vmem:[%s1289_s19 + $0x68] sm:$0xff] %v832_v56  ;;  %880 = vst [vmem:[%s1289_s19 + $0xe8] sm:$0xff] %v848_v57 }
 0x11b PF: > { %s13_s14 = sadd.s32 1, %s1190_s14   ;;  %s1366_s12 = smov %s1186_s13 }
 0x11c   : > { %p10_p5 = scmp.ge.s32.totalorder %s13_s14, 4   ;;  %s1367_s13 = smov %s1369_s15 }
 0x11e   :  { %12 = sbr.rel (!%p10_p5) target bundleno = 2 (0x2), region = 76 }

// kernel: a_call__.4
= control target key start
LH: loop header
LB: loop body
LE: loop exit
PB: predicated region body
PF: predicated region fallthrough
CT: control target
= control target key end

     0   :  { %s1477_s18 = smov 0   ;;  %s1727_s0 = inlined_call_operand.vmem [shape: bf16[512,256], index: 0, kind: input, shape index: {}]   ;;  %s1728_s1 = inlined_call_operand.vmem [shape: bf16[256,128], index: 1, kind: input, shape index: {}]   ;;  %s1729_s2 = inlined_call_operand.vmem [shape: f32[1,128], index: 2, kind: input, shape index: {}, may-alias: {2,4}]   ;;  %s1730_s3 = inlined_call_operand.vmem [shape: bf16[128,128], index: 3, kind: input, shape index: {}]   ;;  %s1731_s4 = inlined_call_operand.vmem [shape: f32[1,128], index: 4, kind: input, shape index: {}, may-alias: {2,4}]   ;;  %s1732_s5 = inlined_call_operand.vmem [shape: f32[512,128], index: 5, kind: output, shape index: {}]  }
   0x1 LB: > { %s1088_s19 = sadd.s32 4294967295, %s1445_s18   ;;  %p1092_p0 = scmp.ge.s32.totalorder %s1445_s18, 1  ;;  %s1445_s18 = sphi %s1477_s18, %s15_s18  }
   0x2   : > { %p189_p1 = scmp.lt.s32.totalorder %s1445_s18, 3 }
   0x4   : > { %p190_p2 = pnand %p1092_p0, %p189_p1 }
   0x5   : > { %v1367_v0 = vld [vmem:[%s1728_s1 + $0x40] sm:$0xff] (!%p190_p2)   ;;  %s1093_s22 = sshll.u32 (!%p190_p2), %s1088_s19, 5  ;;  %v1369_v2 = vld [vmem:[%s1728_s1 + $0x48] sm:$0xff] (!%p190_p2)   ;;  %v1371_v4 = vld [vmem:[%s1728_s1 + $0x50] sm:$0xff] (!%p190_p2)  }
   0x6   : > { %193 = sbr.rel (%p190_p2) target bundleno = 583 (0x247), region = 40  ;;  %v1368_v1 = vld [vmem:[%s1728_s1] sm:$0xff] (!%p190_p2)   ;;  %1159 = vmatprep.subr.bf16.mxu0 (!%p190_p2), %v1367_v0  ;;  %1343 = vmatprep.subr.bf16.mxu1 (!%p190_p2), %v1367_v0  ;;  %v1370_v3 = vld [vmem:[%s1728_s1 + $0x8] sm:$0xff] (!%p190_p2)   ;;  %p219_p3 = scmp.lt.s32.totalorder (!%p190_p2), %s1093_s22, 63  ;;  %v1372_v5 = vld [vmem:[%s1728_s1 + $0x10] sm:$0xff] (!%p190_p2)  }
   0x7   : > { %1160 = vmatpush3.bf16.msra.mxu0 (!%p190_p2), %v1368_v1  ;;  %1351 = vmatpush3.bf16.msra.mxu1 (!%p190_p2), %v1368_v1  ;;  %v1373_v6 = vld [vmem:[%s1728_s1 + $0x58] sm:$0xff] (!%p190_p2)   ;;  %v1375_v8 = vld [vmem:[%s1728_s1 + $0x60] sm:$0xff] (!%p190_p2)   ;;  %v1377_v10 = vld [vmem:[%s1728_s1 + $0x68] sm:$0xff] (!%p190_p2)  }
   0x8   : > { %1161 = vmatprep.subr.bf16.mxu0 (!%p190_p2), %v1369_v2  ;;  %1344 = vmatprep.subr.bf16.mxu1 (!%p190_p2), %v1369_v2  ;;  %v1374_v7 = vld [vmem:[%s1728_s1 + $0x18] sm:$0xff] (!%p190_p2)   ;;  %v1376_v9 = vld [vmem:[%s1728_s1 + $0x20] sm:$0xff] (!%p190_p2)   ;;  %v1378_v12 = vld [vmem:[%s1728_s1 + $0x28] sm:$0xff] (!%p190_p2)  }
   0x9   : > { %v1379_v13 = vld [vmem:[%s1728_s1 + $0x70] sm:$0xff] (!%p190_p2)   ;;  %v1381_v15 = vld [vmem:[%s1728_s1 + $0x78] sm:$0xff] (!%p190_p2)   ;;  %v1431_v26 = vld [vmem:[%s1730_s3] sm:$0xff] (!%p190_p2)  }
   0xa   : > { %v1380_v14 = vld [vmem:[%s1728_s1 + $0x30] sm:$0xff] (!%p190_p2)   ;;  %v1382_v16 = vld [vmem:[%s1728_s1 + $0x38] sm:$0xff] (!%p190_p2)   ;;  %v1432_v27 = vld [vmem:[%s1730_s3 + $0x8] sm:$0xff] (!%p190_p2)  }
   0xb   : > { %1162 = vmatpush3.bf16.msra.mxu0 (!%p190_p2), %v1370_v3  ;;  %1352 = vmatpush3.bf16.msra.mxu1 (!%p190_p2), %v1370_v3  ;;  %v1433_v28 = vld [vmem:[%s1730_s3 + $0x10] sm:$0xff] (!%p190_p2)   ;;  %v1434_v50 = vld [vmem:[%s1730_s3 + $0x18] sm:$0xff] (!%p190_p2)   ;;  %v1435_v52 = vld [vmem:[%s1730_s3 + $0x20] sm:$0xff] (!%p190_p2)  }
   0xc   : > { %1163 = vmatprep.subr.bf16.mxu0 (!%p190_p2), %v1371_v4  ;;  %1345 = vmatprep.subr.bf16.mxu1 (!%p190_p2), %v1371_v4  ;;  %v1436_v53 = vld [vmem:[%s1730_s3 + $0x28] sm:$0xff] (!%p190_p2)   ;;  %v1437_v54 = vld [vmem:[%s1730_s3 + $0x30] sm:$0xff] (!%p190_p2)   ;;  %v1438_v55 = vld [vmem:[%s1730_s3 + $0x38] sm:$0xff] (!%p190_p2)  }
   0xd   : > { %s1734_s22 = smov (!%p219_p3, %s1093_s22), 63  ;;  %v1602_v57 = vld [vmem:[%s1729_s2] ss:$0 sm:$0xff] }
   0xe   : > { %s1158_s12 = sshll.u32 %s1734_s22, 3 }
   0xf   : > { %1164 = vmatpush3.bf16.msra.mxu0 %v1372_v5  ;;  %1353 = vmatpush3.bf16.msra.mxu1 %v1372_v5  ;;  %s1520_s17 = scalar_lea.vmem %s1727_s0, %s1158_s12  ;;  %s1658_s9 = scalar_lea.vmem %s1732_s5, %s1158_s12 }
  0x10   : > { %1165 = vmatprep.subr.bf16.mxu0 %v1373_v6  ;;  %1346 = vmatprep.subr.bf16.mxu1 %v1373_v6  ;;  %v1385_v11 = vld [vmem:[%s1520_s17 + $0x4] ss:$8 sps:$4 sm:$0xff]   ;;  %v1383_v17 = vld [vmem:[%s1520_s17] ss:$8 sps:$4 sm:$0xff]   ;;  %v1386_v19 = vld [vmem:[%s1520_s17 + $0x14] ss:$8 sps:$4 sm:$0xff]  }
  0x11   : > { %591 = vmatprep.mubr.bf16.mxu0 %v1385_v11  ;;  %v1415_v18 = vld [vmem:[%s1520_s17 + $0xc4] ss:$8 sps:$4 sm:$0xff]   ;;  %v1413_v20 = vld [vmem:[%s1520_s17 + $0xc0] ss:$8 sps:$4 sm:$0xff]   ;;  %v1419_v21 = vld [vmem:[%s1520_s17 + $0xd4] ss:$8 sps:$4 sm:$0xff]  }
  0x12   : > { %687 = vmatprep.mubr.bf16.mxu1 %v1415_v18  ;;  %v1388_v22 = vld [vmem:[%s1520_s17 + $0x10] ss:$8 sps:$4 sm:$0xff]   ;;  %v1389_v23 = vld [vmem:[%s1520_s17 + $0x24] ss:$8 sps:$4 sm:$0xff]   ;;  %v1391_v29 = vld [vmem:[%s1520_s17 + $0x20] ss:$8 sps:$4 sm:$0xff]  }
  0x13   : > { %1166 = vmatpush3.bf16.msra.mxu0 %v1374_v7  ;;  %1354 = vmatpush3.bf16.msra.mxu1 %v1374_v7  ;;  %v1421_v24 = vld [vmem:[%s1520_s17 + $0xd0] ss:$8 sps:$4 sm:$0xff]   ;;  %v1425_v25 = vld [vmem:[%s1520_s17 + $0xe4] ss:$8 sps:$4 sm:$0xff]   ;;  %v1392_v30 = vld [vmem:[%s1520_s17 + $0x34] ss:$8 sps:$4 sm:$0xff]  }
  0x14   : > { %1167 = vmatprep.subr.bf16.mxu0 %v1375_v8  ;;  %1347 = vmatprep.subr.bf16.mxu1 %v1375_v8  ;;  %v1427_v31 = vld [vmem:[%s1520_s17 + $0xe0] ss:$8 sps:$4 sm:$0xff]   ;;  %v1428_v32 = vld [vmem:[%s1520_s17 + $0xf4] ss:$8 sps:$4 sm:$0xff]   ;;  %v1394_v33 = vld [vmem:[%s1520_s17 + $0x30] ss:$8 sps:$4 sm:$0xff]  }
  0x15   : > { %v1395_v34 = vld [vmem:[%s1520_s17 + $0x44] ss:$8 sps:$4 sm:$0xff]   ;;  %v1430_v35 = vld [vmem:[%s1520_s17 + $0xf0] ss:$8 sps:$4 sm:$0xff]   ;;  %v1397_v36 = vld [vmem:[%s1520_s17 + $0x40] ss:$8 sps:$4 sm:$0xff]  }
  0x16   : > { %v1398_v37 = vld [vmem:[%s1520_s17 + $0x54] ss:$8 sps:$4 sm:$0xff]   ;;  %v1400_v38 = vld [vmem:[%s1520_s17 + $0x50] ss:$8 sps:$4 sm:$0xff]   ;;  %v1401_v39 = vld [vmem:[%s1520_s17 + $0x64] ss:$8 sps:$4 sm:$0xff]  }
  0x17   : > { %1168 = vmatpush3.bf16.msra.mxu0 %v1376_v9  ;;  %1355 = vmatpush3.bf16.msra.mxu1 %v1376_v9  ;;  %v1403_v40 = vld [vmem:[%s1520_s17 + $0x60] ss:$8 sps:$4 sm:$0xff]   ;;  %v1404_v41 = vld [vmem:[%s1520_s17 + $0x74] ss:$8 sps:$4 sm:$0xff]   ;;  %v1406_v42 = vld [vmem:[%s1520_s17 + $0x70] ss:$8 sps:$4 sm:$0xff]  }
  0x18   : > { %1169 = vmatprep.subr.bf16.mxu0 %v1377_v10  ;;  %1348 = vmatprep.subr.bf16.mxu1 %v1377_v10  ;;  %v1407_v43 = vld [vmem:[%s1520_s17 + $0x84] ss:$8 sps:$4 sm:$0xff]   ;;  %v1409_v44 = vld [vmem:[%s1520_s17 + $0x80] ss:$8 sps:$4 sm:$0xff]   ;;  %v1410_v45 = vld [vmem:[%s1520_s17 + $0x94] ss:$8 sps:$4 sm:$0xff]  }
  0x19   : > { %v1412_v46 = vld [vmem:[%s1520_s17 + $0x90] ss:$8 sps:$4 sm:$0xff]   ;;  %v1416_v47 = vld [vmem:[%s1520_s17 + $0xa4] ss:$8 sps:$4 sm:$0xff]   ;;  %v1418_v48 = vld [vmem:[%s1520_s17 + $0xa0] ss:$8 sps:$4 sm:$0xff]  }
  0x1a   : > { %v1422_v49 = vld [vmem:[%s1520_s17 + $0xb4] ss:$8 sps:$4 sm:$0xff]   ;;  %v1424_v51 = vld [vmem:[%s1520_s17 + $0xb0] ss:$8 sps:$4 sm:$0xff]  }
  0x1b   : > { %1170 = vmatpush3.bf16.msra.mxu0 %v1378_v12  ;;  %1356 = vmatpush3.bf16.msra.mxu1 %v1378_v12 }
  0x1c   : > { %1171 = vmatprep.subr.bf16.mxu0 %v1379_v13  ;;  %1349 = vmatprep.subr.bf16.mxu1 %v1379_v13 }
  0x1f   : > { %1172 = vmatpush3.bf16.msra.mxu0 %v1380_v14  ;;  %1357 = vmatpush3.bf16.msra.mxu1 %v1380_v14 }
  0x20   : > { %1173 = vmatprep.subr.bf16.mxu0 %v1381_v15  ;;  %1350 = vmatprep.subr.bf16.mxu1 %v1381_v15 }
  0x23   : > { %1174 = vmatpush3.bf16.msra.mxu0 %v1382_v16  ;;  %1358 = vmatpush3.bf16.msra.mxu1 %v1382_v16 }
  0x24   : > { %1295 = vmatprep.subr.bf16.mxu1 %v1431_v26 }
  0x26   : > { %592 = vmatmul.mubr.bf16.vlgmr.msra.gmra.mrb[0].mxu0 %v1383_v17  ;;  %688 = vmatmul.mubr.bf16.vlgmr.msra.gmra.mrb[0].mxu1 %v1413_v20 }
  0x27   : > { %599 = vmatprep.mubr.bf16.mxu0 %v1386_v19  ;;  %695 = vmatprep.mubr.bf16.mxu1 %v1419_v21 }
  0x28   : > { %1296 = vmatpush3.bf16.msra.mxu1 %v1431_v26 }
  0x29   : > { %1297 = vmatprep.subr.bf16.mxu1 %v1432_v27 }
  0x2c   : > { %1298 = vmatpush3.bf16.msra.mxu1 %v1432_v27 }
  0x2d   : > { %1299 = vmatprep.subr.bf16.mxu1 %v1433_v28 }
  0x2e   : > { %600 = vmatmul.mubr.bf16.gmra.mrb[4].mxu0 %v1388_v22  ;;  %696 = vmatmul.mubr.bf16.gmra.mrb[4].mxu1 %v1421_v24 }
  0x2f   : > { %607 = vmatprep.mubr.bf16.mxu0 %v1389_v23  ;;  %703 = vmatprep.mubr.bf16.mxu1 %v1425_v25 }
  0x30   : > { %1300 = vmatpush3.bf16.msra.mxu1 %v1433_v28 }
  0x31   : > { %1301 = vmatprep.subr.bf16.mxu1 %v1434_v50 }
  0x34   : > { %1302 = vmatpush3.bf16.msra.mxu1 %v1434_v50 }
  0x35   : > { %1303 = vmatprep.subr.bf16.mxu1 %v1435_v52 }
  0x36   : > { %608 = vmatmul.mubr.bf16.gmra.mrb[8].mxu0 %v1391_v29  ;;  %704 = vmatmul.mubr.bf16.gmra.mrb[8].mxu1 %v1427_v31 }
  0x37   : > { %615 = vmatprep.mubr.bf16.mxu0 %v1392_v30  ;;  %711 = vmatprep.mubr.bf16.mxu1 %v1428_v32 }
  0x38   : > { %1304 = vmatpush3.bf16.msra.mxu1 %v1435_v52 }
  0x39   : > { %1305 = vmatprep.subr.bf16.mxu1 %v1436_v53 }
  0x3c   : > { %1306 = vmatpush3.bf16.msra.mxu1 %v1436_v53 }
  0x3d   : > { %1307 = vmatprep.subr.bf16.mxu1 %v1437_v54 }
  0x3e   : > { %616 = vmatmul.mubr.bf16.gmra.mrb[12].mxu0 %v1394_v33  ;;  %712 = vmatmul.mubr.bf16.gmra.mrb[12].mxu1 %v1430_v35 }
  0x3f   : > { %623 = vmatprep.mubr.bf16.mxu0 %v1395_v34 }
  0x40   : > { %1308 = vmatpush3.bf16.msra.mxu1 %v1437_v54 }
  0x41   : > { %1309 = vmatprep.subr.bf16.mxu1 %v1438_v55 }
  0x44   : > { %1310 = vmatpush3.bf16.msra.mxu1 %v1438_v55 }
  0x46   : > { %624 = vmatmul.mubr.bf16.gmra.mrb[16].mxu0 %v1397_v36 }
  0x47   : > { %631 = vmatprep.mubr.bf16.mxu0 %v1398_v37 }
  0x4e   : > { %632 = vmatmul.mubr.bf16.gmra.mrb[20].mxu0 %v1400_v38 }
  0x4f   : > { %639 = vmatprep.mubr.bf16.mxu0 %v1401_v39 }
  0x56   : > { %640 = vmatmul.mubr.bf16.gmra.mrb[24].mxu0 %v1403_v40 }
  0x57   : > { %647 = vmatprep.mubr.bf16.mxu0 %v1404_v41 }
  0x5e   : > { %648 = vmatmul.mubr.bf16.gmra.mrb[28].mxu0 %v1406_v42 }
  0x5f   : > { %655 = vmatprep.mubr.bf16.mxu0 %v1407_v43 }
  0x66   : > { %656 = vmatmul.mubr.bf16.gmra.mrb[32].mxu0 %v1409_v44 }
  0x67   : > { %663 = vmatprep.mubr.bf16.mxu0 %v1410_v45 }
  0x6e   : > { %664 = vmatmul.mubr.bf16.gmra.mrb[36].mxu0 %v1412_v46 }
  0x6f   : > { %671 = vmatprep.mubr.bf16.mxu0 %v1416_v47 }
  0x76   : > { %672 = vmatmul.mubr.bf16.gmra.mrb[40].mxu0 %v1418_v48 }
  0x77   : > { %679 = vmatprep.mubr.bf16.mxu0 %v1422_v49 }
  0x7e   : > { %680 = vmatmul.mubr.bf16.gmra.mrb[44].mxu0 %v1424_v51 }
  0xf9   : > { %v1175_v56 = vpop.f32.mrb[0].mxu0  ;;  %v1247_v59 = vpop.f32.mrb[0].mxu1 }
  0xfa   : > { %v1176_v58 = vpop.f32.mrb[1].mxu0  ;;  %v1248_v62 = vpop.f32.mrb[1].mxu1 }
  0xfb   : > { %v1177_v60 = vadd.f32 %v1176_v58, %v1175_v56  ;;  %v1178_v61 = vpop.f32.mrb[2].mxu0  ;;  %v1249_v0 = vadd.f32 %v1248_v62, %v1247_v59  ;;  %v1250_v1 = vpop.f32.mrb[2].mxu1 }
  0xfc   : > { %v1179_v63 = vpop.f32.mrb[3].mxu0  ;;  %v1251_v4 = vpop.f32.mrb[3].mxu1 }
  0xfd   : > { %v594_v2 = vadd.f32 %v1177_v60, %v1602_v57  ;;  %v1180_v3 = vadd.f32 %v1179_v63, %v1178_v61  ;;  %v690_v5 = vadd.f32 %v1249_v0, %v1602_v57  ;;  %v1252_v6 = vadd.f32 %v1251_v4, %v1250_v1 }
  0xff   : > { %v597_v7 = vadd.f32 %v1180_v3, %v1602_v57  ;;  %v744_v8 = vmax.f32 %v690_v5, 0.0  ;;  %v693_v9 = vadd.f32 %v1252_v6, %v1602_v57  ;;  %v720_v10 = vmax.f32 %v594_v2, 0.0 }
 0x101   : > { %v721_v11 = vmax.f32 %v597_v7, 0.0  ;;  %v1181_v12 = vpop.f32.mrb[4].mxu0  ;;  %v745_v14 = vmax.f32 %v693_v9, 0.0  ;;  %v1253_v15 = vpop.f32.mrb[4].mxu1 }
 0x102   : > { %v1182_v13 = vpop.f32.mrb[5].mxu0  ;;  %v1254_v19 = vpop.f32.mrb[5].mxu1 }
 0x103   : > { %v1183_v16 = vadd.f32 %v1182_v13, %v1181_v12  ;;  %v1184_v17 = vpop.f32.mrb[6].mxu0  ;;  %v752_v18 = vpack.c.bf16 %v721_v11, %v720_v10  ;;  %v1255_v21 = vadd.f32 %v1254_v19, %v1253_v15  ;;  %v1256_v22 = vpop.f32.mrb[6].mxu1  ;;  %v1608_v23 = vpack.c.bf16 %v745_v14, %v744_v8 }
 0x104   : > { %v1185_v20 = vpop.f32.mrb[7].mxu0  ;;  %v1257_v26 = vpop.f32.mrb[7].mxu1 }
 0x105   : > { %v602_v24 = vadd.f32 %v1183_v16, %v1602_v57  ;;  %v1186_v25 = vadd.f32 %v1185_v20, %v1184_v17  ;;  %1311 = vmatprep.mubr.bf16.mxu1 %v752_v18  ;;  %v698_v27 = vadd.f32 %v1255_v21, %v1602_v57  ;;  %v1258_v28 = vadd.f32 %v1257_v26, %v1256_v22 }
 0x107   : > { %v605_v29 = vadd.f32 %v1186_v25, %v1602_v57  ;;  %v746_v30 = vmax.f32 %v698_v27, 0.0  ;;  %v701_v31 = vadd.f32 %v1258_v28, %v1602_v57  ;;  %v722_v32 = vmax.f32 %v602_v24, 0.0 }
 0x109   : > { %v723_v33 = vmax.f32 %v605_v29, 0.0  ;;  %v1187_v34 = vpop.f32.mrb[8].mxu0  ;;  %v747_v36 = vmax.f32 %v701_v31, 0.0  ;;  %v1259_v37 = vpop.f32.mrb[8].mxu1 }
 0x10a   : > { %v1188_v35 = vpop.f32.mrb[9].mxu0  ;;  %v1260_v41 = vpop.f32.mrb[9].mxu1 }
 0x10b   : > { %v753_v38 = vpack.c.bf16 %v723_v33, %v722_v32  ;;  %v1189_v39 = vadd.f32 %v1188_v35, %v1187_v34  ;;  %v1190_v40 = vpop.f32.mrb[10].mxu0  ;;  %v1261_v43 = vadd.f32 %v1260_v41, %v1259_v37  ;;  %v1262_v44 = vpop.f32.mrb[10].mxu1  ;;  %v1614_v45 = vpack.c.bf16 %v747_v36, %v746_v30 }
 0x10c   : > { %v1191_v42 = vpop.f32.mrb[11].mxu0  ;;  %v1263_v48 = vpop.f32.mrb[11].mxu1 }
 0x10d   : > { %v610_v46 = vadd.f32 %v1189_v39, %v1602_v57  ;;  %v1192_v47 = vadd.f32 %v1191_v42, %v1190_v40  ;;  %1312 = vmatmul.mubr.bf16.vlgmr.msra.gmra.mrb[16].mxu1 %v753_v38  ;;  %v706_v49 = vadd.f32 %v1261_v43, %v1602_v57  ;;  %v1264_v50 = vadd.f32 %v1263_v48, %v1262_v44 }
 0x10f   : > { %v613_v51 = vadd.f32 %v1192_v47, %v1602_v57  ;;  %v748_v52 = vmax.f32 %v706_v49, 0.0  ;;  %v709_v53 = vadd.f32 %v1264_v50, %v1602_v57  ;;  %v724_v54 = vmax.f32 %v610_v46, 0.0 }
 0x111   : > { %v725_v55 = vmax.f32 %v613_v51, 0.0  ;;  %v1193_v56 = vpop.f32.mrb[12].mxu0  ;;  %v749_v59 = vmax.f32 %v709_v53, 0.0  ;;  %v1265_v60 = vpop.f32.mrb[12].mxu1 }
 0x112   : > { %v1194_v58 = vpop.f32.mrb[13].mxu0  ;;  %v1266_v0 = vpop.f32.mrb[13].mxu1 }
 0x113   : > { %v1195_v61 = vadd.f32 %v1194_v58, %v1193_v56  ;;  %v1196_v62 = vpop.f32.mrb[14].mxu0  ;;  %v754_v63 = vpack.c.bf16 %v725_v55, %v724_v54  ;;  %v1267_v2 = vadd.f32 %v1266_v0, %v1265_v60  ;;  %v1268_v3 = vpop.f32.mrb[14].mxu1  ;;  %v1620_v4 = vpack.c.bf16 %v749_v59, %v748_v52 }
 0x114   : > { %v1197_v1 = vpop.f32.mrb[15].mxu0  ;;  %v1269_v7 = vpop.f32.mrb[15].mxu1 }
 0x115   : > { %v618_v5 = vadd.f32 %v1195_v61, %v1602_v57  ;;  %v1198_v6 = vadd.f32 %v1197_v1, %v1196_v62  ;;  %1315 = vmatprep.mubr.bf16.mxu1 %v754_v63  ;;  %v714_v8 = vadd.f32 %v1267_v2, %v1602_v57  ;;  %v1270_v9 = vadd.f32 %v1269_v7, %v1268_v3 }
 0x117   : > { %v621_v10 = vadd.f32 %v1198_v6, %v1602_v57  ;;  %v750_v11 = vmax.f32 %v714_v8, 0.0  ;;  %v717_v12 = vadd.f32 %v1270_v9, %v1602_v57  ;;  %v726_v13 = vmax.f32 %v618_v5, 0.0 }
 0x119   : > { %v727_v14 = vmax.f32 %v621_v10, 0.0  ;;  %v1199_v15 = vpop.f32.mrb[16].mxu0  ;;  %v751_v17 = vmax.f32 %v717_v12, 0.0 }
 0x11a   : > { %v1200_v16 = vpop.f32.mrb[17].mxu0 }
 0x11b   : > { %v1201_v18 = vadd.f32 %v1200_v16, %v1199_v15  ;;  %v1202_v19 = vpop.f32.mrb[18].mxu0  ;;  %v755_v20 = vpack.c.bf16 %v727_v14, %v726_v13  ;;  %v1626_v22 = vpack.c.bf16 %v751_v17, %v750_v11 }
 0x11c   : > { %v1203_v21 = vpop.f32.mrb[19].mxu0 }
 0x11d   : > { %v626_v24 = vadd.f32 %v1201_v18, %v1602_v57  ;;  %v1204_v25 = vadd.f32 %v1203_v21, %v1202_v19  ;;  %1316 = vmatmul.mubr.bf16.gmra.mrb[20].mxu1 %v755_v20 }
 0x11f   : > { %v629_v26 = vadd.f32 %v1204_v25, %v1602_v57  ;;  %v728_v27 = vmax.f32 %v626_v24, 0.0 }
 0x121   : > { %v729_v28 = vmax.f32 %v629_v26, 0.0  ;;  %v1205_v29 = vpop.f32.mrb[20].mxu0 }
 0x122   : > { %v1206_v30 = vpop.f32.mrb[21].mxu0 }
 0x123   : > { %v1207_v31 = vadd.f32 %v1206_v30, %v1205_v29  ;;  %v1208_v32 = vpop.f32.mrb[22].mxu0  ;;  %v756_v33 = vpack.c.bf16 %v729_v28, %v728_v27 }
 0x124   : > { %v1209_v34 = vpop.f32.mrb[23].mxu0 }
 0x125   : > { %v634_v35 = vadd.f32 %v1207_v31, %v1602_v57  ;;  %v1210_v36 = vadd.f32 %v1209_v34, %v1208_v32  ;;  %1319 = vmatprep.mubr.bf16.mxu1 %v756_v33 }
 0x127   : > { %v637_v37 = vadd.f32 %v1210_v36, %v1602_v57  ;;  %v730_v38 = vmax.f32 %v634_v35, 0.0 }
 0x129   : > { %v731_v39 = vmax.f32 %v637_v37, 0.0  ;;  %v1211_v40 = vpop.f32.mrb[24].mxu0 }
 0x12a   : > { %v1212_v41 = vpop.f32.mrb[25].mxu0 }
 0x12b   : > { %v1213_v42 = vadd.f32 %v1212_v41, %v1211_v40  ;;  %v1214_v43 = vpop.f32.mrb[26].mxu0  ;;  %v757_v44 = vpack.c.bf16 %v731_v39, %v730_v38 }
 0x12c   : > { %v1215_v46 = vpop.f32.mrb[27].mxu0 }
 0x12d   : > { %v642_v47 = vadd.f32 %v1213_v42, %v1602_v57  ;;  %v1216_v48 = vadd.f32 %v1215_v46, %v1214_v43  ;;  %1320 = vmatmul.mubr.bf16.gmra.mrb[24].mxu1 %v757_v44 }
 0x12f   : > { %v645_v49 = vadd.f32 %v1216_v48, %v1602_v57  ;;  %v732_v50 = vmax.f32 %v642_v47, 0.0 }
 0x131   : > { %v733_v51 = vmax.f32 %v645_v49, 0.0  ;;  %v1217_v52 = vpop.f32.mrb[28].mxu0  ;;  %v1651_v49 = vld [vmem:[%s1731_s4] ss:$0 sm:$0xff] }
 0x132   : > { %v1218_v53 = vpop.f32.mrb[29].mxu0 }
 0x133   : > { %v1219_v54 = vadd.f32 %v1218_v53, %v1217_v52  ;;  %v1220_v55 = vpop.f32.mrb[30].mxu0  ;;  %v758_v56 = vpack.c.bf16 %v733_v51, %v732_v50 }
 0x134   : > { %v1221_v58 = vpop.f32.mrb[31].mxu0 }
 0x135   : > { %v650_v59 = vadd.f32 %v1219_v54, %v1602_v57  ;;  %v1222_v60 = vadd.f32 %v1221_v58, %v1220_v55  ;;  %1323 = vmatprep.mubr.bf16.mxu1 %v758_v56 }
 0x137   : > { %v653_v61 = vadd.f32 %v1222_v60, %v1602_v57  ;;  %v734_v62 = vmax.f32 %v650_v59, 0.0 }
 0x139   : > { %v735_v63 = vmax.f32 %v653_v61, 0.0  ;;  %v1223_v0 = vpop.f32.mrb[32].mxu0 }
 0x13a   : > { %v1224_v1 = vpop.f32.mrb[33].mxu0 }
 0x13b   : > { %v1225_v2 = vadd.f32 %v1224_v1, %v1223_v0  ;;  %v1226_v3 = vpop.f32.mrb[34].mxu0  ;;  %v759_v5 = vpack.c.bf16 %v735_v63, %v734_v62 }
 0x13c   : > { %v1227_v6 = vpop.f32.mrb[35].mxu0 }
 0x13d   : > { %v658_v7 = vadd.f32 %v1225_v2, %v1602_v57  ;;  %v1228_v8 = vadd.f32 %v1227_v6, %v1226_v3  ;;  %1324 = vmatmul.mubr.bf16.gmra.mrb[28].mxu1 %v759_v5 }
 0x13f   : > { %v661_v9 = vadd.f32 %v1228_v8, %v1602_v57  ;;  %v736_v10 = vmax.f32 %v658_v7, 0.0 }
 0x141   : > { %v737_v11 = vmax.f32 %v661_v9, 0.0  ;;  %v1229_v12 = vpop.f32.mrb[36].mxu0 }
 0x142   : > { %v1230_v13 = vpop.f32.mrb[37].mxu0 }
 0x143   : > { %v1231_v14 = vadd.f32 %v1230_v13, %v1229_v12  ;;  %v1232_v15 = vpop.f32.mrb[38].mxu0  ;;  %v760_v16 = vpack.c.bf16 %v737_v11, %v736_v10 }
 0x144   : > { %v1233_v17 = vpop.f32.mrb[39].mxu0 }
 0x145   : > { %v666_v18 = vadd.f32 %v1231_v14, %v1602_v57  ;;  %v1234_v19 = vadd.f32 %v1233_v17, %v1232_v15  ;;  %1327 = vmatprep.mubr.bf16.mxu1 %v760_v16 }
 0x147   : > { %v669_v20 = vadd.f32 %v1234_v19, %v1602_v57  ;;  %v738_v21 = vmax.f32 %v666_v18, 0.0 }
 0x149   : > { %v739_v24 = vmax.f32 %v669_v20, 0.0  ;;  %v1235_v25 = vpop.f32.mrb[40].mxu0 }
 0x14a   : > { %v1236_v26 = vpop.f32.mrb[41].mxu0 }
 0x14b   : > { %v1237_v27 = vadd.f32 %v1236_v26, %v1235_v25  ;;  %v1238_v28 = vpop.f32.mrb[42].mxu0  ;;  %v761_v29 = vpack.c.bf16 %v739_v24, %v738_v21 }
 0x14c   : > { %v1239_v30 = vpop.f32.mrb[43].mxu0 }
 0x14d   : > { %v674_v31 = vadd.f32 %v1237_v27, %v1602_v57  ;;  %v1240_v32 = vadd.f32 %v1239_v30, %v1238_v28  ;;  %1328 = vmatmul.mubr.bf16.gmra.mrb[32].mxu1 %v761_v29 }
 0x14f   : > { %v677_v33 = vadd.f32 %v1240_v32, %v1602_v57  ;;  %v740_v34 = vmax.f32 %v674_v31, 0.0 }
 0x151   : > { %v741_v35 = vmax.f32 %v677_v33, 0.0  ;;  %v1241_v36 = vpop.f32.mrb[44].mxu0 }
 0x152   : > { %v1242_v37 = vpop.f32.mrb[45].mxu0 }
 0x153   : > { %v1243_v38 = vadd.f32 %v1242_v37, %v1241_v36  ;;  %v1244_v39 = vpop.f32.mrb[46].mxu0  ;;  %v762_v40 = vpack.c.bf16 %v741_v35, %v740_v34 }
 0x154   : > { %v1245_v41 = vpop.f32.mrb[47].mxu0 }
 0x155   : > { %v682_v42 = vadd.f32 %v1243_v38, %v1602_v57  ;;  %v1246_v43 = vadd.f32 %v1245_v41, %v1244_v39  ;;  %1331 = vmatprep.mubr.bf16.mxu1 %v762_v40 }
 0x157   : > { %v685_v44 = vadd.f32 %v1246_v43, %v1602_v57  ;;  %v742_v46 = vmax.f32 %v682_v42, 0.0 }
 0x159   : > { %v743_v47 = vmax.f32 %v685_v44, 0.0 }
 0x15b   : > { %v763_v48 = vpack.c.bf16 %v743_v47, %v742_v46 }
 0x15d   : > { %1332 = vmatmul.mubr.bf16.gmra.mrb[36].mxu1 %v763_v48 }
 0x15e   : > { %1335 = vmatprep.mubr.bf16.mxu1 %v1608_v23 }
 0x165   : > { %1336 = vmatmul.mubr.bf16.gmra.mrb[40].mxu1 %v1614_v45 }
 0x166   : > { %1339 = vmatprep.mubr.bf16.mxu1 %v1620_v4 }
 0x16d   : > { %1340 = vmatmul.mubr.bf16.gmra.mrb[44].mxu1 %v1626_v22 }
 0x1e0   : > { %v1313_v57 = vpop.f32.mrb[16].mxu1 }
 0x1e1   : > { %v882_v23 = vadd.f32 %v1313_v57, %v1651_v49  ;;  %v873_v45 = vpop.f32.mrb[17].mxu1 }
 0x1e2   : > { %v874_v4 = vadd.f32 %v1651_v49, %v873_v45  ;;  %v1314_v22 = vpop.f32.mrb[18].mxu1 }
 0x1e3   : > { %1002 = vst [vmem:[%s1658_s9 + $0x10] sm:$0xff] %v882_v23  ;;  %v885_v50 = vadd.f32 %v1314_v22, %v1651_v49  ;;  %v876_v51 = vpop.f32.mrb[19].mxu1 }
 0x1e4   : > { %1000 = vst [vmem:[%s1658_s9] sm:$0xff] %v874_v4  ;;  %v877_v52 = vadd.f32 %v1651_v49, %v876_v51 }
 0x1e5   : > { %1003 = vst [vmem:[%s1658_s9 + $0x18] sm:$0xff] %v885_v50 }
 0x1e6   : > { %1001 = vst [vmem:[%s1658_s9 + $0x8] sm:$0xff] %v877_v52 }
 0x1f0   : > { %v1317_v53 = vpop.f32.mrb[20].mxu1 }
 0x1f1   : > { %v898_v54 = vadd.f32 %v1317_v53, %v1651_v49  ;;  %v889_v55 = vpop.f32.mrb[21].mxu1 }
 0x1f2   : > { %v890_v56 = vadd.f32 %v1651_v49, %v889_v55  ;;  %v1318_v58 = vpop.f32.mrb[22].mxu1 }
 0x1f3   : > { %1006 = vst [vmem:[%s1658_s9 + $0x30] sm:$0xff] %v898_v54  ;;  %v901_v59 = vadd.f32 %v1318_v58, %v1651_v49  ;;  %v892_v60 = vpop.f32.mrb[23].mxu1 }
 0x1f4   : > { %1004 = vst [vmem:[%s1658_s9 + $0x20] sm:$0xff] %v890_v56  ;;  %v893_v61 = vadd.f32 %v1651_v49, %v892_v60 }
 0x1f5   : > { %1007 = vst [vmem:[%s1658_s9 + $0x38] sm:$0xff] %v901_v59 }
 0x1f6   : > { %1005 = vst [vmem:[%s1658_s9 + $0x28] sm:$0xff] %v893_v61 }
 0x200   : > { %v1321_v62 = vpop.f32.mrb[24].mxu1 }
 0x201   : > { %v914_v63 = vadd.f32 %v1321_v62, %v1651_v49  ;;  %v905_v0 = vpop.f32.mrb[25].mxu1 }
 0x202   : > { %v906_v1 = vadd.f32 %v1651_v49, %v905_v0  ;;  %v1322_v2 = vpop.f32.mrb[26].mxu1 }
 0x203   : > { %1010 = vst [vmem:[%s1658_s9 + $0x50] sm:$0xff] %v914_v63  ;;  %v917_v3 = vadd.f32 %v1322_v2, %v1651_v49  ;;  %v908_v5 = vpop.f32.mrb[27].mxu1 }
 0x204   : > { %1008 = vst [vmem:[%s1658_s9 + $0x40] sm:$0xff] %v906_v1  ;;  %v909_v6 = vadd.f32 %v1651_v49, %v908_v5 }
 0x205   : > { %1011 = vst [vmem:[%s1658_s9 + $0x58] sm:$0xff] %v917_v3 }
 0x206   : > { %1009 = vst [vmem:[%s1658_s9 + $0x48] sm:$0xff] %v909_v6 }
 0x210   : > { %v1325_v7 = vpop.f32.mrb[28].mxu1 }
 0x211   : > { %v930_v8 = vadd.f32 %v1325_v7, %v1651_v49  ;;  %v921_v9 = vpop.f32.mrb[29].mxu1 }
 0x212   : > { %v922_v10 = vadd.f32 %v1651_v49, %v921_v9  ;;  %v1326_v11 = vpop.f32.mrb[30].mxu1 }
 0x213   : > { %1014 = vst [vmem:[%s1658_s9 + $0x70] sm:$0xff] %v930_v8  ;;  %v933_v12 = vadd.f32 %v1326_v11, %v1651_v49  ;;  %v924_v13 = vpop.f32.mrb[31].mxu1 }
 0x214   : > { %1012 = vst [vmem:[%s1658_s9 + $0x60] sm:$0xff] %v922_v10  ;;  %v925_v14 = vadd.f32 %v1651_v49, %v924_v13 }
 0x215   : > { %1015 = vst [vmem:[%s1658_s9 + $0x78] sm:$0xff] %v933_v12 }
 0x216   : > { %1013 = vst [vmem:[%s1658_s9 + $0x68] sm:$0xff] %v925_v14 }
 0x220   : > { %v1329_v15 = vpop.f32.mrb[32].mxu1 }
 0x221   : > { %v946_v16 = vadd.f32 %v1329_v15, %v1651_v49  ;;  %v937_v17 = vpop.f32.mrb[33].mxu1 }
 0x222   : > { %v938_v18 = vadd.f32 %v1651_v49, %v937_v17  ;;  %v1330_v19 = vpop.f32.mrb[34].mxu1 }
 0x223   : > { %1018 = vst [vmem:[%s1658_s9 + $0x90] sm:$0xff] %v946_v16  ;;  %v949_v20 = vadd.f32 %v1330_v19, %v1651_v49  ;;  %v940_v21 = vpop.f32.mrb[35].mxu1 }
 0x224   : > { %1016 = vst [vmem:[%s1658_s9 + $0x80] sm:$0xff] %v938_v18  ;;  %v941_v24 = vadd.f32 %v1651_v49, %v940_v21 }
 0x225   : > { %1019 = vst [vmem:[%s1658_s9 + $0x98] sm:$0xff] %v949_v20 }
 0x226   : > { %1017 = vst [vmem:[%s1658_s9 + $0x88] sm:$0xff] %v941_v24 }
 0x230   : > { %v1333_v25 = vpop.f32.mrb[36].mxu1 }
 0x231   : > { %v962_v26 = vadd.f32 %v1333_v25, %v1651_v49  ;;  %v953_v27 = vpop.f32.mrb[37].mxu1 }
 0x232   : > { %v954_v28 = vadd.f32 %v1651_v49, %v953_v27  ;;  %v1334_v29 = vpop.f32.mrb[38].mxu1 }
 0x233   : > { %1022 = vst [vmem:[%s1658_s9 + $0xb0] sm:$0xff] %v962_v26  ;;  %v965_v30 = vadd.f32 %v1334_v29, %v1651_v49  ;;  %v956_v31 = vpop.f32.mrb[39].mxu1 }
 0x234   : > { %1020 = vst [vmem:[%s1658_s9 + $0xa0] sm:$0xff] %v954_v28  ;;  %v957_v32 = vadd.f32 %v1651_v49, %v956_v31 }
 0x235   : > { %1023 = vst [vmem:[%s1658_s9 + $0xb8] sm:$0xff] %v965_v30 }
 0x236   : > { %1021 = vst [vmem:[%s1658_s9 + $0xa8] sm:$0xff] %v957_v32 }
 0x238   : > { %v1337_v33 = vpop.f32.mrb[40].mxu1 }
 0x239   : > { %v978_v34 = vadd.f32 %v1337_v33, %v1651_v49  ;;  %v969_v35 = vpop.f32.mrb[41].mxu1 }
 0x23a   : > { %v970_v36 = vadd.f32 %v1651_v49, %v969_v35  ;;  %v1338_v37 = vpop.f32.mrb[42].mxu1 }
 0x23b   : > { %1026 = vst [vmem:[%s1658_s9 + $0xd0] sm:$0xff] %v978_v34  ;;  %v981_v38 = vadd.f32 %v1338_v37, %v1651_v49  ;;  %v972_v39 = vpop.f32.mrb[43].mxu1 }
 0x23c   : > { %1024 = vst [vmem:[%s1658_s9 + $0xc0] sm:$0xff] %v970_v36  ;;  %v973_v40 = vadd.f32 %v1651_v49, %v972_v39 }
 0x23d   : > { %1027 = vst [vmem:[%s1658_s9 + $0xd8] sm:$0xff] %v981_v38 }
 0x23e   : > { %1025 = vst [vmem:[%s1658_s9 + $0xc8] sm:$0xff] %v973_v40 }
 0x240   : > { %v1341_v41 = vpop.f32.mrb[44].mxu1 }
 0x241   : > { %v994_v42 = vadd.f32 %v1341_v41, %v1651_v49  ;;  %v985_v43 = vpop.f32.mrb[45].mxu1 }
 0x242   : > { %v986_v44 = vadd.f32 %v1651_v49, %v985_v43  ;;  %v1342_v46 = vpop.f32.mrb[46].mxu1 }
 0x243   : > { %1030 = vst [vmem:[%s1658_s9 + $0xf0] sm:$0xff] %v994_v42  ;;  %v997_v47 = vadd.f32 %v1342_v46, %v1651_v49  ;;  %v988_v48 = vpop.f32.mrb[47].mxu1 }
 0x244   : > { %1028 = vst [vmem:[%s1658_s9 + $0xe0] sm:$0xff] %v986_v44  ;;  %v989_v57 = vadd.f32 %v1651_v49, %v988_v48 }
 0x245   : > { %1031 = vst [vmem:[%s1658_s9 + $0xf8] sm:$0xff] %v997_v47 }
 0x246   : > { %1029 = vst [vmem:[%s1658_s9 + $0xe8] sm:$0xff] %v989_v57 }
 0x247 PF: > { %s15_s18 = sadd.s32 1, %s1445_s18  }
 0x248   : > { %p12_p4 = scmp.ge.s32.totalorder %s15_s18, 4  }
 0x24a   :  { %14 = sbr.rel (!%p12_p4) target bundleno = 1 (0x1), region = 70 }

// kernel: custom-call
= control target key start
LH: loop header
LB: loop body
LE: loop exit
PB: predicated region body
PF: predicated region fallthrough
CT: control target
= control target key end

     0   :  { %5 = vsyncpa [#allocation9], 0  ;;  %v1086_v0 = vmov 2147483648   ;;  %v1087_v1 = vmov 2147483647   ;;  %s1221_s0 = inlined_call_operand.vmem [shape: f32[2,768], index: 0, kind: input, shape index: {}]   ;;  %s1222_s1 = inlined_call_operand.hbm [shape: f32[2,8], index: 1, kind: output, shape index: {0}]   ;;  %s1223_s2 = inlined_call_operand.vmem [shape: s32[2,8], index: 2, kind: output, shape index: {1}]  }
   0x1   :  { %7 = vst [vmem:[#allocation12] sm:$0xff] %v1086_v0  ;;  %8 = vst [vmem:[#allocation14] sm:$0xff] %v1087_v1 }
   0x2   :  { %v1022_v2 = vld [vmem:[%s1221_s0 + $0x8] sm:$0xf]  ;;  %v43_v3 = vlaneseq  ;;  %v27_v4 = vld [vmem:[%s1221_s0] sm:$0xff]  ;;  %v1088_v5 = vmov 2147483648   ;;  %v1089_v6 = vmov 2147483647  }
   0x3   :  { %39 = vst [vmem:[#allocation16 + $0x8] sm:$0xf] %v1022_v2  ;;  %84 = vst [vmem:[#allocation13] sm:$0xff] %v1088_v5  ;;  %v54_v10 = vsub.s32 2147483647, %v27_v4  ;;  %vm53_vm0 = vcmp.lt.s32.totalorder %v27_v4, 0 }
   0x4   :  { %85 = vst [vmem:[#allocation15] sm:$0xff] %v1089_v6  ;;  %v1118_v7 = vshrl.u32 %v43_v3, 7  ;;  %v44_v8 = vand.u32 127, %v43_v3  ;;  %s1122_s0 = smov 0  }
   0x5   :  { %v55_v13 = vsel %vm53_vm0, %v54_v10, %v27_v4 }
   0x6   :  { %v47_v9 = vshrl.u32 %v1118_v7, 1 }
   0x8   :  { %v49_v11 = vmul.u32 128, %v47_v9 }
   0xa   :  { %v50_v12 = vadd.s32 %v49_v11, %v44_v8  ;;  %v61_v14 = vld [vmem:[#allocation16 + $0x8] sm:$0xff] }
   0xb   :  { %vm62_vm1 = vcmp.lt.s32.totalorder %v61_v14, 0  ;;  %v63_v15 = vsub.s32 2147483647, %v61_v14 }
   0xc   :  { %vm57_vm2 = vcmp.lt.s32.totalorder %v50_v12, 768  ;;  %v65_v16 = vadd.s32 512, %v50_v12  ;;  %79 = vst [vmem:[#allocation17] sm:$0xff] %v50_v12 }
   0xd   :  { %v58_v17 = vsel %vm57_vm2, %v55_v13, 2147483648  ;;  %v64_v18 = vsel %vm62_vm1, %v63_v15, %v61_v14 }
   0xe   :  { %59 = vst [vmem:[#allocation16] sm:$0xff] %v58_v17  ;;  %vm66_vm3 = vcmp.lt.s32.totalorder %v65_v16, 768  ;;  %82 = vst [vmem:[#allocation17 + $0x8] sm:$0xff] %v65_v16 }
   0xf   :  { %v67_v19 = vsel %vm66_vm3, %v64_v18, 2147483648 }
  0x10   :  { %68 = vst [vmem:[#allocation16 + $0x8] sm:$0xff] %v67_v19 }
  0x11 LB: > { %s419_s13 = scalar_lea.vmem [#allocation13], %s1084_s0  ;;  %s421_s14 = scalar_lea.vmem [#allocation15], %s1084_s0  ;;  %s1084_s0 = sphi %s1122_s0, %s92_s0  }
  0x12   : > { %s92_s0 = sadd.s32 1, %s1084_s0  }
  0x13   : > { %v94_v21 = vld [vmem:[#allocation17] sm:$0xff]  ;;  %p89_p2 = scmp.ge.s32.totalorder %s92_s0, 8  }
  0x14   :  { %s1095_s0 = smov (%p89_p2), [#allocation8]  }
  0x15   : > { %v93_v20 = vld [vmem:[#allocation16] sm:$0xff]  ;;  %v99_v23 = vld [vmem:[#allocation17 + $0x8] sm:$0xff] }
  0x16   : > { %vm103_vm6 = vcmp.lt.s32.totalorder %v99_v23, %v94_v21 }
  0x17   : > { %v97_v22 = vld [vmem:[#allocation16 + $0x8] sm:$0xff] }
  0x18   : > { %vm101_vm4 = vcmp.gt.s32.totalorder %v97_v22, %v93_v20  ;;  %vm102_vm5 = vcmp.eq.s32.totalorder %v97_v22, %v93_v20 }
  0x19   : > { %vm104_vm7 = vmand %vm102_vm5, %vm103_vm6 }
  0x1a   : > { %vm105_vm8 = vmor %vm101_vm4, %vm104_vm7 }
  0x1b   : > { %v106_v24 = vsel %vm105_vm8, %v97_v22, %v93_v20  ;;  %v107_v25 = vsel %vm105_vm8, %v99_v23, %v94_v21 }
  0x1c   : > { %v109_v26 = vrot.slane %v106_v24, 2  ;;  %v110_v27 = vrot.slane %v107_v25, 2 }
  0x1e   : > { %vm112_vm9 = vcmp.gt.s32.totalorder %v109_v26, %v106_v24  ;;  %vm113_vm10 = vcmp.eq.s32.totalorder %v109_v26, %v106_v24  ;;  %vm114_vm11 = vcmp.lt.s32.totalorder %v110_v27, %v107_v25 }
  0x1f   : > { %vm115_vm12 = vmand %vm113_vm10, %vm114_vm11 }
  0x20   : > { %vm116_vm13 = vmor %vm112_vm9, %vm115_vm12 }
  0x21   : > { %v117_v28 = vsel %vm116_vm13, %v109_v26, %v106_v24  ;;  %v118_v29 = vsel %vm116_vm13, %v110_v27, %v107_v25 }
  0x22   : > { %v120_v30 = vrot.slane %v117_v28, 2  ;;  %v121_v31 = vrot.slane %v118_v29, 2 }
  0x24   : > { %vm123_vm14 = vcmp.gt.s32.totalorder %v120_v30, %v117_v28  ;;  %vm124_vm15 = vcmp.eq.s32.totalorder %v120_v30, %v117_v28  ;;  %vm125_vm0 = vcmp.lt.s32.totalorder %v121_v31, %v118_v29 }
  0x25   : > { %vm126_vm1 = vmand %vm124_vm15, %vm125_vm0 }
  0x26   : > { %vm127_vm2 = vmor %vm123_vm14, %vm126_vm1 }
  0x27   : > { %v128_v32 = vsel %vm127_vm2, %v120_v30, %v117_v28  ;;  %v129_v33 = vsel %vm127_vm2, %v121_v31, %v118_v29 }
  0x28   : > { %v131_v34 = vrot.slane %v128_v32, 2  ;;  %v132_v35 = vrot.slane %v129_v33, 2 }
  0x2a   : > { %vm134_vm3 = vcmp.gt.s32.totalorder %v131_v34, %v128_v32  ;;  %vm135_vm4 = vcmp.eq.s32.totalorder %v131_v34, %v128_v32  ;;  %vm136_vm5 = vcmp.lt.s32.totalorder %v132_v35, %v129_v33 }
  0x2b   : > { %vm137_vm6 = vmand %vm135_vm4, %vm136_vm5 }
  0x2c   : > { %vm138_vm7 = vmor %vm134_vm3, %vm137_vm6 }
  0x2d   : > { %v140_v36 = vsel %vm138_vm7, %v132_v35, %v129_v33  ;;  %v139_v37 = vsel %vm138_vm7, %v131_v34, %v128_v32 }
  0x2e   : > { %174 = vxpose.xlu1.b32.start [1/16] %v140_v36, 128  ;;  %142 = vxpose.xlu0.b32.start [1/16] %v139_v37, 128 }
  0x32   : > { %175 = vxpose.xlu1.b32.cont [2/16] %v140_v36, 128  ;;  %143 = vxpose.xlu0.b32.cont [2/16] %v139_v37, 128 }
  0x36   : > { %176 = vxpose.xlu1.b32.cont [3/16] %v140_v36, 128  ;;  %144 = vxpose.xlu0.b32.cont [3/16] %v139_v37, 128 }
  0x3a   : > { %177 = vxpose.xlu1.b32.cont [4/16] %v140_v36, 128  ;;  %145 = vxpose.xlu0.b32.cont [4/16] %v139_v37, 128 }
  0x3e   : > { %178 = vxpose.xlu1.b32.cont [5/16] %v140_v36, 128  ;;  %146 = vxpose.xlu0.b32.cont [5/16] %v139_v37, 128 }
  0x42   : > { %179 = vxpose.xlu1.b32.cont [6/16] %v140_v36, 128  ;;  %147 = vxpose.xlu0.b32.cont [6/16] %v139_v37, 128 }
  0x46   : > { %180 = vxpose.xlu1.b32.cont [7/16] %v140_v36, 128  ;;  %148 = vxpose.xlu0.b32.cont [7/16] %v139_v37, 128 }
  0x4a   : > { %181 = vxpose.xlu1.b32.cont [8/16] %v140_v36, 128  ;;  %149 = vxpose.xlu0.b32.cont [8/16] %v139_v37, 128 }
  0x4e   : > { %182 = vxpose.xlu1.b32.cont [9/16] %v140_v36, 128  ;;  %150 = vxpose.xlu0.b32.cont [9/16] %v139_v37, 128 }
  0x52   : > { %183 = vxpose.xlu1.b32.cont [10/16] %v140_v36, 128  ;;  %151 = vxpose.xlu0.b32.cont [10/16] %v139_v37, 128 }
  0x56   : > { %184 = vxpose.xlu1.b32.cont [11/16] %v140_v36, 128  ;;  %152 = vxpose.xlu0.b32.cont [11/16] %v139_v37, 128 }
  0x5a   : > { %185 = vxpose.xlu1.b32.cont [12/16] %v140_v36, 128  ;;  %153 = vxpose.xlu0.b32.cont [12/16] %v139_v37, 128 }
  0x5e   : > { %186 = vxpose.xlu1.b32.cont [13/16] %v140_v36, 128  ;;  %154 = vxpose.xlu0.b32.cont [13/16] %v139_v37, 128 }
  0x62   : > { %187 = vxpose.xlu1.b32.cont [14/16] %v140_v36, 128  ;;  %155 = vxpose.xlu0.b32.cont [14/16] %v139_v37, 128 }
  0x66   : > { %188 = vxpose.xlu1.b32.cont [15/16] %v140_v36, 128  ;;  %156 = vxpose.xlu0.b32.cont [15/16] %v139_v37, 128 }
  0x6a   : > { %189 = vxpose.xlu1.b32.end [16/16] %v140_v36, 128  ;;  %157 = vxpose.xlu0.b32.end [16/16] %v139_v37, 128 }
  0xae   : > { %v190_v38 = vpop.trf.xlu1  ;;  %v158_v39 = vpop.trf.xlu0 }
  0xb2   : > { %v191_v40 = vpop.trf.xlu1  ;;  %v159_v41 = vpop.trf.xlu0 }
  0xb3   : > { %vm210_vm8 = vcmp.lt.s32.totalorder %v191_v40, %v190_v38  ;;  %vm208_vm9 = vcmp.gt.s32.totalorder %v159_v41, %v158_v39  ;;  %vm209_vm10 = vcmp.eq.s32.totalorder %v159_v41, %v158_v39 }
  0xb4   : > { %vm211_vm11 = vmand %vm209_vm10, %vm210_vm8 }
  0xb5   : > { %vm212_vm12 = vmor %vm208_vm9, %vm211_vm11 }
  0xb6   : > { %v213_v42 = vsel %vm212_vm12, %v159_v41, %v158_v39  ;;  %v192_v43 = vpop.trf.xlu1  ;;  %v214_v44 = vsel %vm212_vm12, %v191_v40, %v190_v38  ;;  %v160_v45 = vpop.trf.xlu0 }
  0xb7   : > { %vm219_vm13 = vcmp.lt.s32.totalorder %v192_v43, %v214_v44  ;;  %vm217_vm14 = vcmp.gt.s32.totalorder %v160_v45, %v213_v42  ;;  %vm218_vm15 = vcmp.eq.s32.totalorder %v160_v45, %v213_v42 }
  0xb8   : > { %vm220_vm0 = vmand %vm218_vm15, %vm219_vm13 }
  0xb9   : > { %vm221_vm1 = vmor %vm217_vm14, %vm220_vm0 }
  0xba   : > { %v222_v46 = vsel %vm221_vm1, %v160_v45, %v213_v42  ;;  %v193_v47 = vpop.trf.xlu1  ;;  %v223_v48 = vsel %vm221_vm1, %v192_v43, %v214_v44  ;;  %v161_v49 = vpop.trf.xlu0 }
  0xbb   : > { %vm228_vm2 = vcmp.lt.s32.totalorder %v193_v47, %v223_v48  ;;  %vm226_vm3 = vcmp.gt.s32.totalorder %v161_v49, %v222_v46  ;;  %vm227_vm4 = vcmp.eq.s32.totalorder %v161_v49, %v222_v46 }
  0xbc   : > { %vm229_vm5 = vmand %vm227_vm4, %vm228_vm2 }
  0xbd   : > { %vm230_vm6 = vmor %vm226_vm3, %vm229_vm5 }
  0xbe   : > { %v231_v50 = vsel %vm230_vm6, %v161_v49, %v222_v46  ;;  %v194_v51 = vpop.trf.xlu1  ;;  %v232_v52 = vsel %vm230_vm6, %v193_v47, %v223_v48  ;;  %v162_v53 = vpop.trf.xlu0 }
  0xbf   : > { %vm237_vm7 = vcmp.lt.s32.totalorder %v194_v51, %v232_v52  ;;  %vm235_vm8 = vcmp.gt.s32.totalorder %v162_v53, %v231_v50  ;;  %vm236_vm9 = vcmp.eq.s32.totalorder %v162_v53, %v231_v50 }
  0xc0   : > { %vm238_vm10 = vmand %vm236_vm9, %vm237_vm7 }
  0xc1   : > { %vm239_vm11 = vmor %vm235_vm8, %vm238_vm10 }
  0xc2   : > { %v240_v54 = vsel %vm239_vm11, %v162_v53, %v231_v50  ;;  %v195_v55 = vpop.trf.xlu1  ;;  %v241_v56 = vsel %vm239_vm11, %v194_v51, %v232_v52  ;;  %v163_v57 = vpop.trf.xlu0 }
  0xc3   : > { %vm246_vm12 = vcmp.lt.s32.totalorder %v195_v55, %v241_v56  ;;  %vm244_vm13 = vcmp.gt.s32.totalorder %v163_v57, %v240_v54  ;;  %vm245_vm14 = vcmp.eq.s32.totalorder %v163_v57, %v240_v54 }
  0xc4   : > { %vm247_vm15 = vmand %vm245_vm14, %vm246_vm12 }
  0xc5   : > { %vm248_vm0 = vmor %vm244_vm13, %vm247_vm15 }
  0xc6   : > { %v249_v58 = vsel %vm248_vm0, %v163_v57, %v240_v54  ;;  %v196_v59 = vpop.trf.xlu1  ;;  %v250_v60 = vsel %vm248_vm0, %v195_v55, %v241_v56  ;;  %v164_v61 = vpop.trf.xlu0 }
  0xc7   : > { %vm255_vm1 = vcmp.lt.s32.totalorder %v196_v59, %v250_v60  ;;  %vm253_vm2 = vcmp.gt.s32.totalorder %v164_v61, %v249_v58  ;;  %vm254_vm3 = vcmp.eq.s32.totalorder %v164_v61, %v249_v58 }
  0xc8   : > { %vm256_vm4 = vmand %vm254_vm3, %vm255_vm1 }
  0xc9   : > { %vm257_vm5 = vmor %vm253_vm2, %vm256_vm4 }
  0xca   : > { %v258_v62 = vsel %vm257_vm5, %v164_v61, %v249_v58  ;;  %v197_v63 = vpop.trf.xlu1  ;;  %v259_v0 = vsel %vm257_vm5, %v196_v59, %v250_v60  ;;  %v165_v1 = vpop.trf.xlu0 }
  0xcb   : > { %vm264_vm6 = vcmp.lt.s32.totalorder %v197_v63, %v259_v0  ;;  %vm262_vm7 = vcmp.gt.s32.totalorder %v165_v1, %v258_v62  ;;  %vm263_vm8 = vcmp.eq.s32.totalorder %v165_v1, %v258_v62 }
  0xcc   : > { %vm265_vm9 = vmand %vm263_vm8, %vm264_vm6 }
  0xcd   : > { %vm266_vm10 = vmor %vm262_vm7, %vm265_vm9 }
  0xce   : > { %v267_v2 = vsel %vm266_vm10, %v165_v1, %v258_v62  ;;  %v198_v4 = vpop.trf.xlu1  ;;  %v268_v5 = vsel %vm266_vm10, %v197_v63, %v259_v0  ;;  %v166_v6 = vpop.trf.xlu0 }
  0xcf   : > { %vm273_vm11 = vcmp.lt.s32.totalorder %v198_v4, %v268_v5  ;;  %vm271_vm12 = vcmp.gt.s32.totalorder %v166_v6, %v267_v2  ;;  %vm272_vm13 = vcmp.eq.s32.totalorder %v166_v6, %v267_v2 }
  0xd0   : > { %vm274_vm14 = vmand %vm272_vm13, %vm273_vm11 }
  0xd1   : > { %vm275_vm15 = vmor %vm271_vm12, %vm274_vm14 }
  0xd2   : > { %v276_v8 = vsel %vm275_vm15, %v166_v6, %v267_v2  ;;  %v199_v9 = vpop.trf.xlu1  ;;  %v277_v10 = vsel %vm275_vm15, %v198_v4, %v268_v5  ;;  %v167_v11 = vpop.trf.xlu0  ;;  %v1090_v6 = vmov 2147483648  }
  0xd3   : > { %vm282_vm0 = vcmp.lt.s32.totalorder %v199_v9, %v277_v10  ;;  %vm280_vm1 = vcmp.gt.s32.totalorder %v167_v11, %v276_v8  ;;  %vm281_vm2 = vcmp.eq.s32.totalorder %v167_v11, %v276_v8 }
  0xd4   : > { %vm283_vm3 = vmand %vm281_vm2, %vm282_vm0 }
  0xd5   : > { %vm284_vm4 = vmor %vm280_vm1, %vm283_vm3 }
  0xd6   : > { %v285_v12 = vsel %vm284_vm4, %v167_v11, %v276_v8  ;;  %v200_v13 = vpop.trf.xlu1  ;;  %v286_v14 = vsel %vm284_vm4, %v199_v9, %v277_v10  ;;  %v168_v15 = vpop.trf.xlu0  ;;  %v1091_v8 = vmov 2147483647  }
  0xd7   : > { %vm291_vm5 = vcmp.lt.s32.totalorder %v200_v13, %v286_v14  ;;  %vm289_vm6 = vcmp.gt.s32.totalorder %v168_v15, %v285_v12  ;;  %vm290_vm7 = vcmp.eq.s32.totalorder %v168_v15, %v285_v12 }
  0xd8   : > { %vm292_vm8 = vmand %vm290_vm7, %vm291_vm5 }
  0xd9   : > { %vm293_vm9 = vmor %vm289_vm6, %vm292_vm8 }
  0xda   : > { %v294_v16 = vsel %vm293_vm9, %v168_v15, %v285_v12  ;;  %v201_v17 = vpop.trf.xlu1  ;;  %v295_v18 = vsel %vm293_vm9, %v200_v13, %v286_v14  ;;  %v169_v19 = vpop.trf.xlu0  ;;  %v517_v13 = vld [vmem:[#allocation12] sm:$0xff] (%p89_p2)  ;;  %v518_v14 = vld [vmem:[#allocation14] sm:$0xff] (%p89_p2)  ;;  %v1092_v15 = vmov (%p89_p2), 839939668  }
  0xdb   : > { %vm300_vm10 = vcmp.lt.s32.totalorder %v201_v17, %v295_v18  ;;  %vm298_vm11 = vcmp.gt.s32.totalorder %v169_v19, %v294_v16  ;;  %vm299_vm12 = vcmp.eq.s32.totalorder %v169_v19, %v294_v16 }
  0xdc   : > { %vm301_vm13 = vmand %vm299_vm12, %vm300_vm10 }
  0xdd   : > { %vm302_vm14 = vmor %vm298_vm11, %vm301_vm13 }
  0xde   : > { %v303_v20 = vsel %vm302_vm14, %v169_v19, %v294_v16  ;;  %v202_v21 = vpop.trf.xlu1  ;;  %v304_v22 = vsel %vm302_vm14, %v201_v17, %v295_v18  ;;  %v170_v23 = vpop.trf.xlu0  ;;  %v542_v16 = vunpack.c.l.s4 (%p89_p2), %v1092_v15  ;;  %v1093_v17 = vmov (%p89_p2), 1417023538  }
  0xdf   : > { %vm309_vm15 = vcmp.lt.s32.totalorder %v202_v21, %v304_v22  ;;  %vm307_vm0 = vcmp.gt.s32.totalorder %v170_v23, %v303_v20  ;;  %vm308_vm1 = vcmp.eq.s32.totalorder %v170_v23, %v303_v20  ;;  %v570_v18 = vunpack.c.l.s4 (%p89_p2), %v1093_v17 }
  0xe0   : > { %vm310_vm2 = vmand %vm308_vm1, %vm309_vm15  ;;  %v543_v19 = vunpack.c.0.s8 (%p89_p2), %v542_v16 }
  0xe1   : > { %vm311_vm3 = vmor %vm307_vm0, %vm310_vm2 }
  0xe2   : > { %v312_v24 = vsel %vm311_vm3, %v170_v23, %v303_v20  ;;  %v203_v25 = vpop.trf.xlu1  ;;  %v313_v26 = vsel %vm311_vm3, %v202_v21, %v304_v22  ;;  %v171_v27 = vpop.trf.xlu0  ;;  %v563_v23 = vand.u32 (%p89_p2), 4, %v1118_v7 }
  0xe3   : > { %vm318_vm4 = vcmp.lt.s32.totalorder %v203_v25, %v313_v26  ;;  %vm316_vm5 = vcmp.gt.s32.totalorder %v171_v27, %v312_v24  ;;  %vm317_vm6 = vcmp.eq.s32.totalorder %v171_v27, %v312_v24 }
  0xe4   : > { %vm319_vm7 = vmand %vm317_vm6, %vm318_vm4 }
  0xe5   : > { %vm320_vm8 = vmor %vm316_vm5, %vm319_vm7 }
  0xe6   : > { %v321_v28 = vsel %vm320_vm8, %v171_v27, %v312_v24  ;;  %v204_v29 = vpop.trf.xlu1  ;;  %v322_v30 = vsel %vm320_vm8, %v203_v25, %v313_v26  ;;  %v172_v31 = vpop.trf.xlu0  ;;  %v571_v25 = vunpack.c.0.s8 (%p89_p2), %v570_v18 }
  0xe7   : > { %vm327_vm9 = vcmp.lt.s32.totalorder %v204_v29, %v322_v30  ;;  %vm325_vm10 = vcmp.gt.s32.totalorder %v172_v31, %v321_v28  ;;  %vm326_vm11 = vcmp.eq.s32.totalorder %v172_v31, %v321_v28 }
  0xe8   : > { %vm328_vm12 = vmand %vm326_vm11, %vm327_vm9 }
  0xe9   : > { %vm329_vm13 = vmor %vm325_vm10, %vm328_vm12 }
  0xea   : > { %v330_v32 = vsel %vm329_vm13, %v172_v31, %v321_v28  ;;  %v205_v33 = vpop.trf.xlu1  ;;  %v331_v34 = vsel %vm329_vm13, %v204_v29, %v322_v30  ;;  %v173_v35 = vpop.trf.xlu0  ;;  %v1094_v31 = vmov (%p89_p2), 1732584193  }
  0xeb   : > { %vm336_vm14 = vcmp.lt.s32.totalorder %v205_v33, %v331_v34  ;;  %vm334_vm15 = vcmp.gt.s32.totalorder %v173_v35, %v330_v32  ;;  %vm335_vm0 = vcmp.eq.s32.totalorder %v173_v35, %v330_v32 }
  0xec   : > { %vm337_vm1 = vmand %vm335_vm0, %vm336_vm14 }
  0xed   : > { %vm338_vm2 = vmor %vm334_vm15, %vm337_vm1 }
  0xee   : > { %v339_v36 = vsel %vm338_vm2, %v173_v35, %v330_v32  ;;  %v340_v37 = vsel %vm338_vm2, %v205_v33, %v331_v34  ;;  %v598_v32 = vunpack.c.l.s4 (%p89_p2), %v1094_v31  ;;  %v1147_v33 = vsub.s32 (%p89_p2), %v571_v25, %v1118_v7 }
  0xef   : > { %v342_v38 = vrot.slane %v339_v36, 1  ;;  %v343_v39 = vrot.slane %v340_v37, 1  ;;  %v591_v34 = vand.u32 (%p89_p2), 2, %v1118_v7 }
  0xf1   : > { %vm345_vm3 = vcmp.gt.s32.totalorder %v342_v38, %v339_v36  ;;  %vm346_vm4 = vcmp.eq.s32.totalorder %v342_v38, %v339_v36  ;;  %vm347_vm5 = vcmp.lt.s32.totalorder %v343_v39, %v340_v37 }
  0xf2   : > { %vm348_vm6 = vmand %vm346_vm4, %vm347_vm5 }
  0xf3   : > { %vm349_vm7 = vmor %vm345_vm3, %vm348_vm6 }
  0xf4   : > { %v350_v40 = vsel %vm349_vm7, %v342_v38, %v339_v36  ;;  %v351_v41 = vsel %vm349_vm7, %v343_v39, %v340_v37  ;;  %v599_v37 = vunpack.c.0.s8 (%p89_p2), %v598_v32 }
  0xf5   : > { %v353_v42 = vrot.slane %v350_v40, 1  ;;  %v354_v43 = vrot.slane %v351_v41, 1 }
  0xf7   : > { %vm356_vm8 = vcmp.gt.s32.totalorder %v353_v42, %v350_v40  ;;  %vm357_vm9 = vcmp.eq.s32.totalorder %v353_v42, %v350_v40  ;;  %vm358_vm10 = vcmp.lt.s32.totalorder %v354_v43, %v351_v41 }
  0xf8   : > { %vm359_vm11 = vmand %vm357_vm9, %vm358_vm10 }
  0xf9   : > { %vm360_vm12 = vmor %vm356_vm8, %vm359_vm11 }
  0xfa   : > { %v361_v44 = vsel %vm360_vm12, %v353_v42, %v350_v40  ;;  %v362_v45 = vsel %vm360_vm12, %v354_v43, %v351_v41  ;;  %v1161_v42 = vsub.s32 (%p89_p2), %v599_v37, %v1118_v7 }
  0xfb   : > { %v364_v46 = vrot.slane %v361_v44, 1  ;;  %v365_v47 = vrot.slane %v362_v45, 1 }
  0xfd   : > { %vm369_vm13 = vcmp.lt.s32.totalorder %v365_v47, %v362_v45  ;;  %vm367_vm14 = vcmp.gt.s32.totalorder %v364_v46, %v361_v44  ;;  %vm368_vm15 = vcmp.eq.s32.totalorder %v364_v46, %v361_v44 }
  0xfe   : > { %vm370_vm0 = vmand %vm368_vm15, %vm369_vm13 }
  0xff   : > { %vm371_vm1 = vmor %vm367_vm14, %vm370_vm0 }
 0x100   : > { %v372_v48 = vsel %vm371_vm1, %v364_v46, %v361_v44  ;;  %v373_v49 = vsel %vm371_vm1, %v365_v47, %v362_v45  ;;  %v619_v46 = vand.u32 (%p89_p2), 1, %v1118_v7 }
 0x101   : > { %v375_v50 = vrot.slane %v372_v48, 1  ;;  %v376_v51 = vrot.slane %v373_v49, 1 }
 0x103   : > { %vm378_vm2 = vcmp.gt.s32.totalorder %v375_v50, %v372_v48  ;;  %vm379_vm3 = vcmp.eq.s32.totalorder %v375_v50, %v372_v48  ;;  %vm380_vm4 = vcmp.lt.s32.totalorder %v376_v51, %v373_v49 }
 0x104   : > { %vm381_vm5 = vmand %vm379_vm3, %vm380_vm4 }
 0x105   : > { %vm382_vm6 = vmor %vm378_vm2, %vm381_vm5 }
 0x106   : > { %v383_v52 = vsel %vm382_vm6, %v375_v50, %v372_v48  ;;  %v384_v53 = vsel %vm382_vm6, %v376_v51, %v373_v49 }
 0x107   : > { %v386_v54 = vrot.slane %v383_v52, 1  ;;  %v387_v55 = vrot.slane %v384_v53, 1 }
 0x109   : > { %vm389_vm7 = vcmp.gt.s32.totalorder %v386_v54, %v383_v52  ;;  %vm390_vm8 = vcmp.eq.s32.totalorder %v386_v54, %v383_v52  ;;  %vm391_vm9 = vcmp.lt.s32.totalorder %v387_v55, %v384_v53 }
 0x10a   : > { %vm392_vm10 = vmand %vm390_vm8, %vm391_vm9 }
 0x10b   : > { %vm393_vm11 = vmor %vm389_vm7, %vm392_vm10 }
 0x10c   : > { %v394_v56 = vsel %vm393_vm11, %v386_v54, %v383_v52  ;;  %v395_v57 = vsel %vm393_vm11, %v387_v55, %v384_v53 }
 0x10d   : > { %v397_v58 = vrot.slane %v394_v56, 1  ;;  %v398_v59 = vrot.slane %v395_v57, 1 }
 0x10f   : > { %vm400_vm12 = vcmp.gt.s32.totalorder %v397_v58, %v394_v56  ;;  %vm401_vm13 = vcmp.eq.s32.totalorder %v397_v58, %v394_v56  ;;  %vm402_vm14 = vcmp.lt.s32.totalorder %v398_v59, %v395_v57 }
 0x110   : > { %vm403_vm15 = vmand %vm401_vm13, %vm402_vm14  ;;  %vm1141_vm13 = vcmp.ne.s32.totalorder (%p89_p2), %v563_v23, 0 }
 0x111   : > { %vm404_vm0 = vmor %vm400_vm12, %vm403_vm15 }
 0x112   : > { %v405_v60 = vsel %vm404_vm0, %v397_v58, %v394_v56  ;;  %v406_v61 = vsel %vm404_vm0, %v398_v59, %v395_v57 }
 0x113   : > { %v408_v62 = vrot.slane %v405_v60, 1  ;;  %v409_v63 = vrot.slane %v406_v61, 1 }
 0x115   : > { %vm411_vm1 = vcmp.gt.s32.totalorder %v408_v62, %v405_v60  ;;  %vm412_vm2 = vcmp.eq.s32.totalorder %v408_v62, %v405_v60  ;;  %vm413_vm3 = vcmp.lt.s32.totalorder %v409_v63, %v406_v61 }
 0x116   : > { %vm414_vm4 = vmand %vm412_vm2, %vm413_vm3 }
 0x117   : > { %vm415_vm5 = vmor %vm411_vm1, %vm414_vm4 }
 0x118   : > { %v417_v0 = vsel %vm415_vm5, %v409_v63, %v406_v61  ;;  %v416_v1 = vsel %vm415_vm5, %v408_v62, %v405_v60 }
 0x119   : > { %424 = vxpose.xlu0.b32.start.end [1/1] (short) (narrow) %v417_v0, 8  ;;  %420 = vst [vmem:[%s419_s13] sm:$0x1] %v416_v1  ;;  %422 = vst [vmem:[%s421_s14] sm:$0x1] %v417_v0  ;;  %s958_s13 = sshll.u32 (%p89_p2), %s1095_s0, 4  ;;  %s959_s13 = int_to_ptr.vmem [resolvable:$true] %s958_s13 }
 0x11a   :  { %s1054_s14 = scalar_lea.vmem (%p89_p2), %s959_s13, 32  ;;  %p1059_p4 = scmp.lt.s32.totalorder (%p89_p2), %s959_s13, %s959_s13 }
 0x11b   :  { %p1055_p3 = scmp.ne.s32.totalorder (%p89_p2), %s959_s13, %s1054_s14  ;;  %p1060_p5 = scmp.lt.s32.totalorder (%p89_p2), %s1054_s14, %s1054_s14 }
 0x11d   :  { %p1061_p6 = por (%p89_p2), %p1060_p5, %p1059_p4 }
 0x11f   :  { %p1062_p7 = pnand (%p89_p2), %p1061_p6, %p1055_p3 }
 0x120   :  { %v505_v11 = vld [vmem:[#allocation13 + $0x7] ss:$-1 sm:$0xff] (%p89_p2)  ;;  %v511_v12 = vld [vmem:[#allocation15 + $0x7] ss:$-1 sm:$0xff] (%p89_p2) }
 0x121   :  { %vm523_vm8 = vcmp.gt.s32.totalorder (%p89_p2), %v517_v13, %v505_v11  ;;  %vm524_vm9 = vcmp.eq.s32.totalorder (%p89_p2), %v517_v13, %v505_v11  ;;  %vm525_vm10 = vcmp.lt.s32.totalorder (%p89_p2), %v518_v14, %v511_v12 }
 0x122   :  { %vm526_vm11 = vmand (%p89_p2), %vm524_vm9, %vm525_vm10  ;;  %vm1154_vm9 = vcmp.ne.s32.totalorder (%p89_p2), %v591_v34, 0 }
 0x123   :  { %vm527_vm12 = vmor (%p89_p2), %vm523_vm8, %vm526_vm11 }
 0x124   :  { %v528_v20 = vsel (%p89_p2), %vm527_vm12, %v517_v13, %v505_v11  ;;  %v530_v21 = vsel (%p89_p2), %vm527_vm12, %v505_v11, %v517_v13  ;;  %v532_v22 = vsel (%p89_p2), %vm527_vm12, %v518_v14, %v511_v12  ;;  %v534_v24 = vsel (%p89_p2), %vm527_vm12, %v511_v12, %v518_v14 }
 0x199   : > { %v440_v2 = vpop.trf.xlu0 }
 0x19a   : > { %v479_v4 = vrot.slane %v440_v2, 1  ;;  %1031 = vpush %v440_v2 }
 0x19c   : > { %1033 = vpush %v479_v4 }
 0x1cb   : > { %s1032_s15 = spop %1031 }
 0x1cc   : > { %s457_s16 = sshrl.u32 %s1032_s15, 9  ;;  %s459_s17 = ssub.s32 0, %s1032_s15 }
 0x1cd   : > { %p458_p0 = scmp.lt.s32.totalorder %s1032_s15, 0  ;;  %s1023_s18 = smin.u32 %s1032_s15, %s459_s17 }
 0x1ce   : > { %s461_s19 = sand.u32 511, %s1023_s18   ;;  %s1025_s20 = sshll.u32 %s457_s16, 3 }
 0x1cf   : > { %s462_s21 = ssub.s32 0, %s461_s19  ;;  %s1034_s22 = spop %1033 }
 0x1d0   : > { %s1231_s21 = smov (!%p458_p0, %s462_s21), %s461_s19  ;;  %s483_s26 = ssub.s32 0, %s1034_s22 }
 0x1d1   : > { %s464_s23 = sshrl.u32 %s1231_s21, 7  ;;  %s466_s24 = sand.u32 127, %s1231_s21  }
 0x1d2   : > { %s1024_s25 = sshll.u32 %s464_s23, 8  ;;  %s1027_s28 = smin.u32 %s1034_s22, %s483_s26 }
 0x1d3   : > { %s467_s27 = sadd.s32 %s1024_s25, %s466_s24  ;;  %p482_p1 = scmp.lt.s32.totalorder %s1034_s22, 0 }
 0x1d4   : > { %v469_v5 = vstv %s467_s27  ;;  %s485_s29 = sand.u32 511, %s1027_s28   ;;  %s473_s3 = scalar_lea.vmem [#allocation16], %s1025_s20 }
 0x1d5   : > { %vm471_vm6 = vcmp.eq.s32.totalorder %v43_v3, %v469_v5  ;;  %s486_s30 = ssub.s32 0, %s485_s29  ;;  %s476_s4 = scalar_lea.vmem [#allocation17], %s1025_s20 }
 0x1d6   : > { %474 = vst.msk [vmem:[%s473_s3] sm:$0xff] %vm471_vm6, %v1090_v6  ;;  %477 = vst.msk [vmem:[%s476_s4] sm:$0xff] %vm471_vm6, %v1091_v8  ;;  %s1233_s30 = smov (!%p482_p1, %s486_s30), %s485_s29  ;;  %s481_s5 = sshrl.u32 %s1034_s22, 9 }
 0x1d7   : > { %s488_s6 = sshrl.u32 %s1233_s30, 7  ;;  %s490_s7 = sand.u32 127, %s1233_s30  }
 0x1d8   : > { %s1028_s8 = sshll.u32 %s488_s6, 8  ;;  %s1029_s10 = sshll.u32 %s481_s5, 3 }
 0x1d9   : > { %s491_s9 = sadd.s32 %s1028_s8, %s490_s7  ;;  %s497_s11 = scalar_lea.vmem [#allocation16], %s1029_s10 }
 0x1da   : > { %v493_v9 = vstv %s491_s9  ;;  %s500_s12 = scalar_lea.vmem [#allocation17], %s1029_s10  ;;  %91 = sbr.rel (!%p89_p2) target bundleno = 17 (0x11), region = 107 }
 0x1db   : > { %v494_v10 = vadd.s32 128, %v493_v9 }
 0x1dd   : > { %vm495_vm7 = vcmp.eq.s32.totalorder %v43_v3, %v494_v10  ;;  %v1136_v3 = vsub.s32 (%p89_p2), %v543_v19, %v1118_v7 }
 0x1de   : > { %498 = vst.msk [vmem:[%s497_s11] sm:$0xff] %vm495_vm7, %v1090_v6  ;;  %501 = vst.msk [vmem:[%s500_s12] sm:$0xff] %vm495_vm7, %v1091_v8 }
 0x1df   :  { %v547_v26 = vrot.slane (%p89_p2), %v528_v20, %v1136_v3  ;;  %v554_v27 = vrot.slane (%p89_p2), %v532_v22, %v1136_v3  ;;  %v728_v28 = vrot.slane (%p89_p2), %v530_v21, %v1136_v3  ;;  %v735_v30 = vrot.slane (%p89_p2), %v534_v24, %v1136_v3 }
 0x1e1   :  { %vm556_vm14 = vcmp.gt.s32.totalorder %v528_v20, %v547_v26  ;;  %vm557_vm15 = vcmp.eq.s32.totalorder %v528_v20, %v547_v26  ;;  %vm558_vm0 = vcmp.lt.s32.totalorder %v532_v22, %v554_v27  ;;  %vm738_vm2 = vcmp.eq.s32.totalorder %v530_v21, %v728_v28 }
 0x1e2   :  { %vm559_vm1 = vmand %vm557_vm15, %vm558_vm0  ;;  %vm739_vm3 = vcmp.lt.s32.totalorder %v534_v24, %v735_v30  ;;  %vm737_vm5 = vcmp.gt.s32.totalorder %v530_v21, %v728_v28 }
 0x1e3   :  { %vm560_vm4 = vmor %vm556_vm14, %vm559_vm1 }
 0x1e4   :  { %vm565_vm6 = vmxor %vm560_vm4, %vm1141_vm13 }
 0x1e5   :  { %v566_v35 = vsel %vm565_vm6, %v528_v20, %v547_v26  ;;  %v567_v36 = vsel %vm565_vm6, %v532_v22, %v554_v27  ;;  %vm740_vm7 = vmand %vm738_vm2, %vm739_vm3 }
 0x1e6   :  { %v575_v38 = vrot.slane %v566_v35, %v1147_v33  ;;  %v582_v39 = vrot.slane %v567_v36, %v1147_v33  ;;  %vm741_vm8 = vmor %vm737_vm5, %vm740_vm7 }
 0x1e7   :  { %vm746_vm10 = vmxor %vm741_vm8, %vm1141_vm13 }
 0x1e8   :  { %vm584_vm11 = vcmp.gt.s32.totalorder %v566_v35, %v575_v38  ;;  %vm585_vm12 = vcmp.eq.s32.totalorder %v566_v35, %v575_v38  ;;  %vm586_vm14 = vcmp.lt.s32.totalorder %v567_v36, %v582_v39  ;;  %v747_v41 = vsel %vm746_vm10, %v530_v21, %v728_v28 }
 0x1e9   :  { %vm587_vm15 = vmand %vm585_vm12, %vm586_vm14  ;;  %v748_v43 = vsel %vm746_vm10, %v534_v24, %v735_v30  ;;  %v756_v44 = vrot.slane %v747_v41, %v1147_v33 }
 0x1ea   :  { %vm588_vm0 = vmor %vm584_vm11, %vm587_vm15  ;;  %v763_v45 = vrot.slane %v748_v43, %v1147_v33  ;;  %vm1170_vm11 = vcmp.ne.s32.totalorder %v619_v46, 0 }
 0x1eb   :  { %vm593_vm1 = vmxor %vm588_vm0, %vm1154_vm9  ;;  %vm765_vm2 = vcmp.gt.s32.totalorder %v747_v41, %v756_v44  ;;  %vm766_vm3 = vcmp.eq.s32.totalorder %v747_v41, %v756_v44 }
 0x1ec   :  { %v594_v47 = vsel %vm593_vm1, %v566_v35, %v575_v38  ;;  %v595_v48 = vsel %vm593_vm1, %v567_v36, %v582_v39  ;;  %vm767_vm4 = vcmp.lt.s32.totalorder %v748_v43, %v763_v45 }
 0x1ed   :  { %v603_v49 = vrot.slane %v594_v47, %v1161_v42  ;;  %v610_v50 = vrot.slane %v595_v48, %v1161_v42  ;;  %vm768_vm5 = vmand %vm766_vm3, %vm767_vm4 }
 0x1ee   :  { %vm769_vm6 = vmor %vm765_vm2, %vm768_vm5 }
 0x1ef   :  { %vm612_vm7 = vcmp.gt.s32.totalorder %v594_v47, %v603_v49  ;;  %vm613_vm8 = vcmp.eq.s32.totalorder %v594_v47, %v603_v49  ;;  %vm614_vm10 = vcmp.lt.s32.totalorder %v595_v48, %v610_v50  ;;  %vm774_vm12 = vmxor %vm769_vm6, %vm1154_vm9 }
 0x1f0   :  { %vm615_vm14 = vmand %vm613_vm8, %vm614_vm10  ;;  %v775_v7 = vsel %vm774_vm12, %v747_v41, %v756_v44  ;;  %v776_v52 = vsel %vm774_vm12, %v748_v43, %v763_v45 }
 0x1f1   :  { %vm616_vm15 = vmor %vm612_vm7, %vm615_vm14  ;;  %v784_v53 = vrot.slane %v775_v7, %v1161_v42  ;;  %v791_v54 = vrot.slane %v776_v52, %v1161_v42 }
 0x1f2   :  { %vm621_vm0 = vmxor %vm616_vm15, %vm1170_vm11 }
 0x1f3   :  { %v622_v55 = vsel %vm621_vm0, %v594_v47, %v603_v49  ;;  %v623_v56 = vsel %vm621_vm0, %v595_v48, %v610_v50  ;;  %vm793_vm1 = vcmp.gt.s32.totalorder %v775_v7, %v784_v53  ;;  %vm794_vm2 = vcmp.eq.s32.totalorder %v775_v7, %v784_v53 }
 0x1f4   :  { %v637_v57 = vrot.slane %v622_v55, %v1136_v3  ;;  %v644_v58 = vrot.slane %v623_v56, %v1136_v3  ;;  %vm795_vm3 = vcmp.lt.s32.totalorder %v776_v52, %v791_v54 }
 0x1f5   :  { %vm796_vm4 = vmand %vm794_vm2, %vm795_vm3 }
 0x1f6   :  { %vm646_vm5 = vcmp.gt.s32.totalorder %v622_v55, %v637_v57  ;;  %vm647_vm6 = vcmp.eq.s32.totalorder %v622_v55, %v637_v57  ;;  %vm648_vm7 = vcmp.lt.s32.totalorder %v623_v56, %v644_v58  ;;  %vm797_vm8 = vmor %vm793_vm1, %vm796_vm4 }
 0x1f7   :  { %vm649_vm10 = vmand %vm647_vm6, %vm648_vm7 }
 0x1f8   :  { %vm650_vm12 = vmor %vm646_vm5, %vm649_vm10 }
 0x1f9   :  { %vm655_vm14 = vmxor %vm650_vm12, %vm1141_vm13 }
 0x1fa   :  { %v656_v59 = vsel %vm655_vm14, %v622_v55, %v637_v57  ;;  %v657_v60 = vsel %vm655_vm14, %v623_v56, %v644_v58  ;;  %vm802_vm15 = vmxor %vm797_vm8, %vm1170_vm11 }
 0x1fb   :  { %v665_v61 = vrot.slane %v656_v59, %v1147_v33  ;;  %v672_v62 = vrot.slane %v657_v60, %v1147_v33  ;;  %v803_v63 = vsel %vm802_vm15, %v775_v7, %v784_v53  ;;  %v804_v0 = vsel %vm802_vm15, %v776_v52, %v791_v54 }
 0x1fc   :  { %v818_v1 = vrot.slane %v803_v63, %v1136_v3  ;;  %v825_v2 = vrot.slane %v804_v0, %v1136_v3 }
 0x1fd   :  { %vm674_vm0 = vcmp.gt.s32.totalorder %v656_v59, %v665_v61  ;;  %vm675_vm1 = vcmp.eq.s32.totalorder %v656_v59, %v665_v61  ;;  %vm676_vm2 = vcmp.lt.s32.totalorder %v657_v60, %v672_v62 }
 0x1fe   :  { %vm677_vm3 = vmand %vm675_vm1, %vm676_vm2  ;;  %vm828_vm4 = vcmp.eq.s32.totalorder %v803_v63, %v818_v1  ;;  %vm829_vm5 = vcmp.lt.s32.totalorder %v804_v0, %v825_v2  ;;  %vm827_vm7 = vcmp.gt.s32.totalorder %v803_v63, %v818_v1 }
 0x1ff   :  { %vm678_vm6 = vmor %vm674_vm0, %vm677_vm3 }
 0x200   :  { %vm683_vm8 = vmxor %vm678_vm6, %vm1154_vm9 }
 0x201   :  { %v684_v4 = vsel %vm683_vm8, %v656_v59, %v665_v61  ;;  %v685_v5 = vsel %vm683_vm8, %v657_v60, %v672_v62  ;;  %vm830_vm10 = vmand %vm828_vm4, %vm829_vm5 }
 0x202   :  { %v693_v6 = vrot.slane %v684_v4, %v1161_v42  ;;  %v700_v8 = vrot.slane %v685_v5, %v1161_v42  ;;  %vm831_vm12 = vmor %vm827_vm7, %vm830_vm10 }
 0x203   :  { %vm836_vm14 = vmxor %vm831_vm12, %vm1141_vm13 }
 0x204   :  { %vm702_vm15 = vcmp.gt.s32.totalorder %v684_v4, %v693_v6  ;;  %vm703_vm1 = vcmp.eq.s32.totalorder %v684_v4, %v693_v6  ;;  %vm704_vm2 = vcmp.lt.s32.totalorder %v685_v5, %v700_v8  ;;  %v837_v9 = vsel %vm836_vm14, %v803_v63, %v818_v1 }
 0x205   :  { %vm705_vm0 = vmand %vm703_vm1, %vm704_vm2  ;;  %v838_v10 = vsel %vm836_vm14, %v804_v0, %v825_v2  ;;  %v846_v11 = vrot.slane %v837_v9, %v1147_v33 }
 0x206   :  { %vm706_vm3 = vmor %vm702_vm15, %vm705_vm0  ;;  %v853_v12 = vrot.slane %v838_v10, %v1147_v33 }
 0x207   :  { %vm711_vm4 = vmxor %vm706_vm3, %vm1170_vm11  ;;  %vm855_vm5 = vcmp.gt.s32.totalorder %v837_v9, %v846_v11  ;;  %vm856_vm6 = vcmp.eq.s32.totalorder %v837_v9, %v846_v11 }
 0x208   :  { %v712_v13 = vsel %vm711_vm4, %v684_v4, %v693_v6  ;;  %v713_v14 = vsel %vm711_vm4, %v685_v5, %v700_v8  ;;  %vm857_vm7 = vcmp.lt.s32.totalorder %v838_v10, %v853_v12 }
 0x209   :  { %715 = vst [vmem:[#allocation12] sm:$0xff] %v712_v13  ;;  %716 = vst [vmem:[#allocation14] sm:$0xff] %v713_v14 }
 0x20a   :  { %vm858_vm13 = vmand %vm856_vm6, %vm857_vm7 }
 0x20b   :  { %vm859_vm8 = vmor %vm855_vm5, %vm858_vm13 }
 0x20c   :  { %vm864_vm10 = vmxor %vm859_vm8, %vm1154_vm9 }
 0x20d   :  { %v865_v15 = vsel %vm864_vm10, %v837_v9, %v846_v11  ;;  %v866_v16 = vsel %vm864_vm10, %v838_v10, %v853_v12 }
 0x20e   :  { %v874_v17 = vrot.slane %v865_v15, %v1161_v42  ;;  %v881_v18 = vrot.slane %v866_v16, %v1161_v42 }
 0x210   :  { %vm883_vm12 = vcmp.gt.s32.totalorder %v865_v15, %v874_v17  ;;  %vm884_vm14 = vcmp.eq.s32.totalorder %v865_v15, %v874_v17  ;;  %vm885_vm15 = vcmp.lt.s32.totalorder %v866_v16, %v881_v18  ;;  %v923_v21 = vld [vmem:[#allocation14] sm:$0xff]  ;;  %v899_v22 = vld [vmem:[#allocation12] sm:$0xff] }
 0x211   :  { %vm886_vm1 = vmand %vm884_vm14, %vm885_vm15  ;;  %924 = vxpose.xlu0.b32.start.end [1/1] (short) (narrow) %v923_v21, 8  ;;  %vm900_vm9 = vcmp.lt.s32.totalorder %v899_v22, 0  ;;  %v901_v23 = vsub.s32 2147483647, %v899_v22 }
 0x212   :  { %vm887_vm2 = vmor %vm883_vm12, %vm886_vm1 }
 0x213   :  { %vm892_vm0 = vmxor %vm887_vm2, %vm1170_vm11  ;;  %v902_v24 = vsel %vm900_vm9, %v901_v23, %v899_v22 }
 0x214   :  { %v893_v19 = vsel %vm892_vm0, %v865_v15, %v874_v17  ;;  %v894_v20 = vsel %vm892_vm0, %v866_v16, %v881_v18  ;;  %903 = vst [vmem:[#allocation12] sm:$0xff] %v902_v24 }
 0x215   :  { %896 = vst [vmem:[#allocation13] sm:$0xff] %v893_v19  ;;  %897 = vst [vmem:[#allocation15] sm:$0xff] %v894_v20  ;;  %905 = vxpose.xlu0.b32.start.end [1/1] (short) (narrow) %v902_v24, 8 }
 0x291   :  { %v925_v3 = vpop.trf.xlu0 }
 0x292   :  { %941 = vst [vmem:[#allocation10] sm:$0xff] %v925_v3 }
 0x295   :  { %v906_v25 = vpop.trf.xlu0 }
 0x296   :  { %922 = vst [vmem:[#allocation7] sm:$0xff] %v906_v25 }
 0x299   :  { %v951_v26 = vld [vmem:[#allocation10] sm:$0x3] }
 0x29a   :  { %953 = vst [vmem:[#allocation11] sm:$0x3] %v951_v26 }
 0x29d   :  { %v945_v27 = vld [vmem:[#allocation7] sm:$0x3] }
 0x29e   :  { %947 = vst [vmem:[#allocation8] sm:$0x3] %v945_v27 }
 0x29f   :  { %1065 = shalt.err (!%p1062_p7)
}
 0x2a0   :  { %s1066_s17 = scalar_lea.hbm %s1222_s1, 32 }
 0x2a1   :  { %p1067_p8 = scmp.ne.s32.totalorder %s1222_s1, %s1066_s17  ;;  %p1070_p9 = scmp.lt.u32.totalorder %s1066_s17, %s1222_s1 }
 0x2a3   :  { %p1072_p10 = pnand %p1070_p9, %p1067_p8 }
 0x2a5   :  { %1075 = shalt.err (!%p1072_p10)
}
 0x2a6   :  { %961 = dma.vmem_to_hbm [thread:$0]  %s959_s13, 32, %s1222_s1, [#allocation9]   ;;  %v977_v28 = vld [vmem:[#allocation11] sm:$0x3] }
 0x2a7   :  { %978 = vst [vmem:[%s1223_s2] sm:$0x3] %v977_v28 }
 0x2a8   :  { %1080 = dma.done.wait [#allocation9], 32  }
 0x2a9   :  { %1081 = vsyncadd [#allocation9], 4294967264 }
 0x2aa   :  { %994 = vsyncpa [#allocation9], 1 }

// kernel: a_call__.5
= control target key start
LH: loop header
LB: loop body
LE: loop exit
PB: predicated region body
PF: predicated region fallthrough
CT: control target
= control target key end

     0   :  { %v605_v1 = vmov 0.0   ;;  %vm606_vm0 = vmmov 0   ;;  %s782_s1 = inlined_call_operand.vmem [shape: bf16[256,128], index: 1, kind: input, shape index: {}]   ;;  %s783_s0 = inlined_call_operand.vmem [shape: bf16[16,256], index: 0, kind: input, shape index: {}]   ;;  %s784_s3 = inlined_call_operand.vmem [shape: bf16[128,128], index: 3, kind: input, shape index: {}]   ;;  %s785_s5 = inlined_call_operand.vmem [shape: bf16[128,128], index: 5, kind: input, shape index: {}]   ;;  %s786_s2 = inlined_call_operand.vmem [shape: f32[1,128], index: 2, kind: input, shape index: {}, may-alias: {2,4,6}]   ;;  %s787_s4 = inlined_call_operand.vmem [shape: f32[1,128], index: 4, kind: input, shape index: {}, may-alias: {2,4,6}]   ;;  %s788_s6 = inlined_call_operand.vmem [shape: f32[1,128], index: 6, kind: input, shape index: {}, may-alias: {2,4,6}]   ;;  %s789_s7 = inlined_call_operand.vmem [shape: f32[16,128], index: 7, kind: output, shape index: {}]  }
   0x1   :  { %v570_v0 = vld [vmem:[%s782_s1 + $0x40] sm:$0xff]   ;;  %528 = vmatprep.subr.bf16.mxu1 %v605_v1  ;;  %v572_v3 = vld [vmem:[%s782_s1 + $0x48] sm:$0xff]   ;;  %v574_v5 = vld [vmem:[%s782_s1 + $0x50] sm:$0xff]   ;;  %544 = vmatprep.mubr.msk.bf16.mxu1 %vm606_vm0, %v605_v1 }
   0x2   :  { %v571_v2 = vld [vmem:[%s782_s1] sm:$0xff]   ;;  %488 = vmatprep.subr.bf16.mxu0 %v570_v0  ;;  %v573_v4 = vld [vmem:[%s782_s1 + $0x8] sm:$0xff]   ;;  %v575_v6 = vld [vmem:[%s782_s1 + $0x10] sm:$0xff]  }
   0x3   :  { %489 = vmatpush3.bf16.msra.mxu0 %v571_v2  ;;  %v576_v7 = vld [vmem:[%s782_s1 + $0x58] sm:$0xff]   ;;  %v578_v9 = vld [vmem:[%s782_s1 + $0x60] sm:$0xff]   ;;  %v580_v11 = vld [vmem:[%s782_s1 + $0x68] sm:$0xff]  }
   0x4   :  { %490 = vmatprep.subr.bf16.mxu0 %v572_v3  ;;  %v577_v8 = vld [vmem:[%s782_s1 + $0x18] sm:$0xff]   ;;  %v579_v10 = vld [vmem:[%s782_s1 + $0x20] sm:$0xff]   ;;  %v581_v12 = vld [vmem:[%s782_s1 + $0x28] sm:$0xff]  }
   0x5   :  { %v588_v13 = vld [vmem:[%s783_s0 + $0x4] ss:$8 sps:$4 sm:$0xff]   ;;  %v582_v15 = vld [vmem:[%s782_s1 + $0x70] sm:$0xff]   ;;  %v584_v18 = vld [vmem:[%s782_s1 + $0x78] sm:$0xff]  }
   0x6   :  { %v589_v14 = vld [vmem:[%s784_s3] sm:$0xff]   ;;  %206 = vmatprep.mubr.bf16.mxu0 %v588_v13  ;;  %v590_v16 = vld [vmem:[%s784_s3 + $0x8] sm:$0xff]   ;;  %v583_v17 = vld [vmem:[%s782_s1 + $0x30] sm:$0xff]  }
   0x7   :  { %491 = vmatpush3.bf16.msra.mxu0 %v573_v4  ;;  %529 = vmatpush3.bf16.msra.mxu1 %v589_v14  ;;  %v591_v19 = vld [vmem:[%s784_s3 + $0x10] sm:$0xff]   ;;  %v585_v20 = vld [vmem:[%s782_s1 + $0x38] sm:$0xff]   ;;  %v586_v22 = vld [vmem:[%s783_s0] ss:$8 sps:$4 sm:$0xff]  }
   0x8   :  { %492 = vmatprep.subr.bf16.mxu0 %v574_v5  ;;  %530 = vmatprep.subr.bf16.mxu1 %v605_v1  ;;  %v592_v21 = vld [vmem:[%s784_s3 + $0x18] sm:$0xff]   ;;  %v593_v23 = vld [vmem:[%s784_s3 + $0x20] sm:$0xff]   ;;  %v594_v24 = vld [vmem:[%s784_s3 + $0x28] sm:$0xff]  }
   0x9   :  { %v595_v25 = vld [vmem:[%s784_s3 + $0x30] sm:$0xff]   ;;  %v596_v26 = vld [vmem:[%s784_s3 + $0x38] sm:$0xff]   ;;  %v597_v27 = vld [vmem:[%s785_s5] sm:$0xff]  }
   0xa   :  { %v598_v28 = vld [vmem:[%s785_s5 + $0x8] sm:$0xff]   ;;  %v599_v29 = vld [vmem:[%s785_s5 + $0x10] sm:$0xff]   ;;  %v600_v30 = vld [vmem:[%s785_s5 + $0x18] sm:$0xff]  }
   0xb   :  { %493 = vmatpush3.bf16.msra.mxu0 %v575_v6  ;;  %531 = vmatpush3.bf16.msra.mxu1 %v590_v16  ;;  %v601_v31 = vld [vmem:[%s785_s5 + $0x20] sm:$0xff]   ;;  %v602_v32 = vld [vmem:[%s785_s5 + $0x28] sm:$0xff]   ;;  %v603_v45 = vld [vmem:[%s785_s5 + $0x30] sm:$0xff]  }
   0xc   :  { %494 = vmatprep.subr.bf16.mxu0 %v576_v7  ;;  %532 = vmatprep.subr.bf16.mxu1 %v605_v1  ;;  %v451_v34 = vld [vmem:[%s786_s2] ss:$0 sm:$0xff]  ;;  %v604_v46 = vld [vmem:[%s785_s5 + $0x38] sm:$0xff]  }
   0xd   :  { %v470_v47 = vld [vmem:[%s787_s4] ss:$0 sm:$0xff] }
   0xe   :  { %v479_v57 = vld [vmem:[%s788_s6] ss:$0 sm:$0xff] }
   0xf   :  { %495 = vmatpush3.bf16.msra.mxu0 %v577_v8  ;;  %533 = vmatpush3.bf16.msra.mxu1 %v591_v19 }
  0x10   :  { %496 = vmatprep.subr.bf16.mxu0 %v578_v9  ;;  %534 = vmatprep.subr.bf16.mxu1 %v605_v1 }
  0x13   :  { %497 = vmatpush3.bf16.msra.mxu0 %v579_v10  ;;  %535 = vmatpush3.bf16.msra.mxu1 %v592_v21 }
  0x14   :  { %498 = vmatprep.subr.bf16.mxu0 %v580_v11  ;;  %536 = vmatprep.subr.bf16.mxu1 %v605_v1 }
  0x17   :  { %499 = vmatpush3.bf16.msra.mxu0 %v581_v12  ;;  %537 = vmatpush3.bf16.msra.mxu1 %v593_v23 }
  0x18   :  { %500 = vmatprep.subr.bf16.mxu0 %v582_v15  ;;  %538 = vmatprep.subr.bf16.mxu1 %v605_v1 }
  0x1b   :  { %501 = vmatpush3.bf16.msra.mxu0 %v583_v17  ;;  %539 = vmatpush3.bf16.msra.mxu1 %v594_v24 }
  0x1c   :  { %502 = vmatprep.subr.bf16.mxu0 %v584_v18  ;;  %540 = vmatprep.subr.bf16.mxu1 %v605_v1 }
  0x1f   :  { %503 = vmatpush3.bf16.msra.mxu0 %v585_v20  ;;  %541 = vmatpush3.bf16.msra.mxu1 %v595_v25 }
  0x20   :  { %548 = vmatprep.subr.bf16.mxu0 %v605_v1  ;;  %542 = vmatprep.subr.bf16.mxu1 %v605_v1 }
  0x22   :  { %207 = vmatmul.mubr.bf16.vlgmr.msra.gmra.mrb[0].mxu0 %v586_v22 }
  0x23   :  { %543 = vmatpush3.bf16.msra.mxu1 %v596_v26  ;;  %564 = vmatprep.mubr.msk.bf16.mxu0 %vm606_vm0, %v605_v1 }
  0x24   :  { %549 = vmatpush3.bf16.msra.mxu0 %v597_v27 }
  0x25   :  { %550 = vmatprep.subr.bf16.mxu0 %v605_v1 }
  0x28   :  { %551 = vmatpush3.bf16.msra.mxu0 %v598_v28 }
  0x29   :  { %552 = vmatprep.subr.bf16.mxu0 %v605_v1 }
  0x2c   :  { %553 = vmatpush3.bf16.msra.mxu0 %v599_v29 }
  0x2d   :  { %554 = vmatprep.subr.bf16.mxu0 %v605_v1 }
  0x30   :  { %555 = vmatpush3.bf16.msra.mxu0 %v600_v30 }
  0x31   :  { %556 = vmatprep.subr.bf16.mxu0 %v605_v1 }
  0x34   :  { %557 = vmatpush3.bf16.msra.mxu0 %v601_v31 }
  0x35   :  { %558 = vmatprep.subr.bf16.mxu0 %v605_v1 }
  0x38   :  { %559 = vmatpush3.bf16.msra.mxu0 %v602_v32 }
  0x39   :  { %560 = vmatprep.subr.bf16.mxu0 %v605_v1 }
  0x3c   :  { %561 = vmatpush3.bf16.msra.mxu0 %v603_v45 }
  0x3d   :  { %562 = vmatprep.subr.bf16.mxu0 %v605_v1 }
  0x40   :  { %563 = vmatpush3.bf16.msra.mxu0 %v604_v46 }
  0xf5   :  { %v504_v33 = vpop.f32.mrb[0].mxu0 }
  0xf6   :  { %v505_v35 = vpop.f32.mrb[1].mxu0 }
  0xf7   :  { %v506_v36 = vadd.f32 %v505_v35, %v504_v33  ;;  %v507_v37 = vpop.f32.mrb[2].mxu0 }
  0xf8   :  { %v508_v38 = vpop.f32.mrb[3].mxu0 }
  0xf9   :  { %v209_v39 = vadd.f32 %v506_v36, %v451_v34  ;;  %v509_v40 = vadd.f32 %v508_v38, %v507_v37 }
  0xfb   :  { %v212_v41 = vadd.f32 %v509_v40, %v451_v34  ;;  %v215_v42 = vmax.f32 %v209_v39, 0.0 }
  0xfd   :  { %v216_v43 = vmax.f32 %v212_v41, 0.0 }
  0xff   :  { %v217_v44 = vpack.c.bf16 %v216_v43, %v215_v42 }
 0x101   :  { %545 = vmatmul.mubr.bf16.vlgmr.msra.gmra.mrb[0].mxu1 %v217_v44 }
 0x1d4   :  { %v323_v48 = vpop.f32.mrb[0].mxu1 }
 0x1d5   :  { %v324_v49 = vadd.f32 %v470_v47, %v323_v48  ;;  %v546_v50 = vpop.f32.mrb[1].mxu1 }
 0x1d6   :  { %v326_v51 = vpop.f32.mrb[2].mxu1 }
 0x1d7   :  { %v327_v52 = vadd.f32 %v470_v47, %v326_v51  ;;  %v547_v53 = vpop.f32.mrb[3].mxu1  ;;  %v330_v54 = vmax.f32 %v324_v49, 0.0 }
 0x1d9   :  { %v331_v55 = vmax.f32 %v327_v52, 0.0 }
 0x1db   :  { %v332_v56 = vpack.c.bf16 %v331_v55, %v330_v54 }
 0x1dd   :  { %565 = vmatmul.mubr.bf16.vlgmr.msra.gmra.mrb[4].mxu0 %v332_v56 }
 0x2b0   :  { %v438_v58 = vpop.f32.mrb[4].mxu0 }
 0x2b1   :  { %v439_v59 = vadd.f32 %v479_v57, %v438_v58  ;;  %v566_v60 = vpop.f32.mrb[5].mxu0 }
 0x2b2   :  { %v441_v61 = vpop.f32.mrb[6].mxu0 }
 0x2b3   :  { %445 = vst [vmem:[%s789_s7] sm:$0xff] %v439_v59  ;;  %v442_v62 = vadd.f32 %v479_v57, %v441_v61  ;;  %v567_v63 = vpop.f32.mrb[7].mxu0 }
 0x2b5   :  { %446 = vst [vmem:[%s789_s7 + $0x8] sm:$0xff] %v442_v62 }

</bundles_post_ra>
